<compile_context>
chip_gen: v7x
topology: tpu7x:2x2x1
jax: 0.10.0
libtpu: 0.0.40
codegen_flags: <defaults>
</compile_context>

<pallas_src>
import jax
import jax.numpy as jnp
from jax.experimental import pallas as pl
from jax.experimental.pallas import tpu as pltpu


def _make_fused_block_kernel(*, C, D, H, W):
    """conv1+bn1+relu -> conv2+bn2 -> +x -> relu on one (C, D*H*W) batch slab."""
    HW = H * W
    DHW = D * H * W
    # Bitwise coordinate recovery below needs power-of-two H, W (D is free).
    # TODO(synk): general H/W needs //,% (or host-precomputed masks).
    assert H & (H - 1) == 0 and W & (W - 1) == 0, "power-of-two H, W required"
    taps = [(kd, kh, kw) for kd in (-1, 0, 1)
            for kh in (-1, 0, 1) for kw in (-1, 0, 1)]

    def kernel(x_ref, w1_ref, w2_ref, s1_ref, b1_ref, s2_ref, b2_ref,
               out_ref, xcol_ref):
        x = x_ref[...]                                   # (C, DHW) f32

        # Zero-halo validity masks, built once from a fused-spatial lane iota.
        # d = pos // HW, h = (pos // W) % H, w = pos % W -- expressed with
        # compares / bitwise-and only (no vector integer division).
        pos = jax.lax.broadcasted_iota(jnp.int32, (C, DHW), 1)
        r_hw = jnp.bitwise_and(pos, HW - 1)              # h*W + w
        r_w = jnp.bitwise_and(pos, W - 1)                # w
        dmask = (pos >= HW, pos < (D - 1) * HW)          # (d >= 1, d <= D-2)
        hmask = (r_hw >= W, r_hw < HW - W)               # (h >= 1, h <= H-2)
        wmask = (r_w >= 1, r_w < W - 1)                  # (w >= 1, w <= W-2)

        def tap_mask(kd, kh, kw):
            m = None
            for k, (m_neg, m_pos) in ((kd, dmask), (kh, hmask), (kw, wmask)):
                if k == 0:
                    continue
                mk = m_neg if k < 0 else m_pos
                m = mk if m is None else jnp.logical_and(m, mk)
            return m

        def conv3x3x3(inp, w_ref):
            # Build the (27C, DHW) f32 im2col slab: each tap is a static lane
            # roll of `inp` (wrap positions are exactly the zero-padding
            # positions and get masked), stored to a sublane-aligned 8-row
            # block of the scratch.
            for t, (kd, kh, kw) in enumerate(taps):
                s = kd * HW + kh * W + kw                # flat source offset
                slab = inp if s == 0 else jnp.roll(inp, -s, axis=1)
                m = tap_mask(kd, kh, kw)
                if m is not None:
                    slab = jnp.where(m, slab, 0.0)
                xcol_ref[t * C:(t + 1) * C, :] = slab
            # Single K = 27*C matmul on the MXU (bf16 operands, f32 accumulate);
            # output (C, DHW) is lane-dense.
            return jnp.dot(w_ref[...], xcol_ref[...].astype(jnp.bfloat16),
                           preferred_element_type=jnp.float32)

        # --- conv1 + bn1 + relu (f32 epilogue on 2 vregs) ---------------------
        h1 = conv3x3x3(x, w1_ref)
        h1 = jnp.maximum(h1 * s1_ref[...] + b1_ref[...], 0.0)

        # --- conv2 + bn2 + identity residual + relu ---------------------------
        h2 = conv3x3x3(h1, w2_ref)
        h2 = h2 * s2_ref[...] + b2_ref[...] + x          # residual from resident x
        out_ref[...] = jnp.maximum(h2, 0.0).astype(out_ref.dtype)

    return kernel


def fold_bn(gamma, beta, running_mean, running_var, eps=1e-5):
    scale = gamma / jnp.sqrt(running_var + eps)
    shift = beta - running_mean * scale
    return scale, shift


@jax.jit
def basic_block_forward(x_ncdhw, params):
    """BasicBlock.forward.  x_ncdhw: (N, C, D, H, W) float32."""
    N, Cin, D, H, W = x_ncdhw.shape
    Cout = params["w1"].shape[-1]
    assert Cin == Cout, "identity residual requires inplanes == planes"
    C = Cout
    DHW = D * H * W

    # Channel-first with fused spatial: metadata-only reshape, no transpose.
    x2 = x_ncdhw.reshape(N, C, DHW)

    s1, b1 = fold_bn(*params["bn1"])
    s2, b2 = fold_bn(*params["bn2"])

    # DHWIO weight (kd,kh,kw,ci,co) -> (co, kd*9+kh*3+kw, ci) -> (Cout, 27*Cin),
    # matching the kernel's tap enumeration order and per-tap ci-minor columns.
    def w_mat(w):
        return jnp.transpose(w, (4, 0, 1, 2, 3)).reshape(C, 27 * C).astype(jnp.bfloat16)

    full = lambda n: (0, 0)
    out2d = pl.pallas_call(
        _make_fused_block_kernel(C=C, D=D, H=H, W=W),
        out_shape=jax.ShapeDtypeStruct((N, C, DHW), x_ncdhw.dtype),
        grid=(N,),
        in_specs=[
            pl.BlockSpec((None, C, DHW), lambda n: (n, 0, 0)),   # x (per batch)
            pl.BlockSpec((C, 27 * C), full),                     # w1
            pl.BlockSpec((C, 27 * C), full),                     # w2
            pl.BlockSpec((C, 1), full),                          # bn1 scale
            pl.BlockSpec((C, 1), full),                          # bn1 shift
            pl.BlockSpec((C, 1), full),                          # bn2 scale
            pl.BlockSpec((C, 1), full),                          # bn2 shift
        ],
        out_specs=pl.BlockSpec((None, C, DHW), lambda n: (n, 0, 0)),
        scratch_shapes=[pltpu.VMEM((27 * C, DHW), jnp.float32)],  # im2col slab
        compiler_params=pltpu.CompilerParams(
            dimension_semantics=("parallel",)),
    )(x2, w_mat(params["w1"]), w_mat(params["w2"]),
      s1.reshape(C, 1).astype(jnp.float32), b1.reshape(C, 1).astype(jnp.float32),
      s2.reshape(C, 1).astype(jnp.float32), b2.reshape(C, 1).astype(jnp.float32))

    return out2d.reshape(N, C, D, H, W)


def _reference_forward(x_ncdhw, params):
    """Pure-JAX reference (lax conv, bf16 operands / f32 accumulation to match
    the kernel's MXU path)."""
    x = jnp.transpose(x_ncdhw, (0, 2, 3, 4, 1))

    def conv(v, w):
        return jax.lax.conv_general_dilated(
            v.astype(jnp.bfloat16), w.astype(jnp.bfloat16),
            window_strides=(1, 1, 1),
            padding=((1, 1), (1, 1), (1, 1)),
            dimension_numbers=("NDHWC", "DHWIO", "NDHWC"),
            preferred_element_type=jnp.float32)

    s1, b1 = fold_bn(*params["bn1"])
    s2, b2 = fold_bn(*params["bn2"])
    o = jnp.maximum(conv(x, params["w1"]) * s1 + b1, 0.0)
    o = conv(o, params["w2"]) * s2 + b2 + x
    o = jnp.maximum(o, 0.0)
    return jnp.transpose(o, (0, 4, 1, 2, 3))


if __name__ == "__main__":
    # Small shapes: N=2, inplanes=planes=8, D=4, H=W=8, stride=1, downsample=None.
    N, C, D, H, W = 2, 8, 4, 8, 8
    inplanes = planes = C

    key = jax.random.PRNGKey(0)
    kx, kw1, kw2 = jax.random.split(key, 3)

    x = jax.random.normal(kx, (N, C, D, H, W), dtype=jnp.float32)

    # Deterministic parameter init (conv weights ~ N(0, 0.1^2); BN at PyTorch
    # defaults: gamma=1, beta=0, running_mean=0, running_var=1).
    params = {
        "w1": 0.1 * jax.random.normal(kw1, (3, 3, 3, inplanes, planes), jnp.float32),
        "w2": 0.1 * jax.random.normal(kw2, (3, 3, 3, planes, planes), jnp.float32),
        "bn1": (jnp.ones((planes,)), jnp.zeros((planes,)),
                jnp.zeros((planes,)), jnp.ones((planes,))),
        "bn2": (jnp.ones((planes,)), jnp.zeros((planes,)),
                jnp.zeros((planes,)), jnp.ones((planes,))),
    }

    out = jax.block_until_ready(basic_block_forward(x, params))
    assert out.shape == (N, planes, D, H, W), out.shape

    ref = jax.block_until_ready(_reference_forward(x, params))
    max_err = float(jnp.max(jnp.abs(out - ref)))
    assert jnp.allclose(out, ref, atol=2e-2, rtol=2e-2), max_err

    print("KERNEL_OK")
</pallas_src>

<mosaic_0001>
module attributes {stable_mosaic.version = 11 : i64} {
  func.func @kernel(%arg0: i32, %arg1: memref<1x8x256xf32, #tpu.memory_space<vmem>>, %arg2: memref<8x216xbf16, #tpu.memory_space<vmem>>, %arg3: memref<8x216xbf16, #tpu.memory_space<vmem>>, %arg4: memref<8x1xf32, #tpu.memory_space<vmem>>, %arg5: memref<8x1xf32, #tpu.memory_space<vmem>>, %arg6: memref<8x1xf32, #tpu.memory_space<vmem>>, %arg7: memref<8x1xf32, #tpu.memory_space<vmem>>, %arg8: memref<1x8x256xf32, #tpu.memory_space<vmem>>, %arg9: memref<216x256xf32, #tpu.memory_space<vmem>>) attributes {dimension_semantics = [#tpu.dimension_semantics<parallel>], iteration_bounds = array<i64: 2>, scalar_prefetch = 0 : i64, scratch_operands = 1 : i64, tpu.core_type = #tpu.core_type<tc>, window_params = [{transform_indices = @transform_0, window_bounds = array<i64: 1, 8, 256>}, {pipeline_mode = #tpu.pipeline_mode<synchronous>, transform_indices = @transform_1, window_bounds = array<i64: 8, 216>}, {pipeline_mode = #tpu.pipeline_mode<synchronous>, transform_indices = @transform_2, window_bounds = array<i64: 8, 216>}, {pipeline_mode = #tpu.pipeline_mode<synchronous>, transform_indices = @transform_3, window_bounds = array<i64: 8, 1>}, {pipeline_mode = #tpu.pipeline_mode<synchronous>, transform_indices = @transform_4, window_bounds = array<i64: 8, 1>}, {pipeline_mode = #tpu.pipeline_mode<synchronous>, transform_indices = @transform_5, window_bounds = array<i64: 8, 1>}, {pipeline_mode = #tpu.pipeline_mode<synchronous>, transform_indices = @transform_6, window_bounds = array<i64: 8, 1>}, {transform_indices = @transform_7, window_bounds = array<i64: 1, 8, 256>}]} {
    %c0 = arith.constant 0 : index
    %c0_0 = arith.constant 0 : index
    %c0_1 = arith.constant 0 : index
    %0 = vector.load %arg1[%c0, %c0_0, %c0_1] : memref<1x8x256xf32, #tpu.memory_space<vmem>>, vector<1x8x256xf32>
    %1 = vector.shape_cast %0 : vector<1x8x256xf32> to vector<8x256xf32>
    %2 = tpu.iota {dimensions = array<i32: 1>} : vector<8x256xi32>
    %c63_i32 = arith.constant 63 : i32
    %3 = vector.broadcast %c63_i32 : i32 to vector<8x256xi32>
    %4 = arith.andi %2, %3 : vector<8x256xi32>
    %c7_i32 = arith.constant 7 : i32
    %5 = vector.broadcast %c7_i32 : i32 to vector<8x256xi32>
    %6 = arith.andi %2, %5 : vector<8x256xi32>
    %c64_i32 = arith.constant 64 : i32
    %7 = vector.broadcast %c64_i32 : i32 to vector<8x256xi32>
    %8 = arith.cmpi sge, %2, %7 : vector<8x256xi32>
    %c192_i32 = arith.constant 192 : i32
    %9 = vector.broadcast %c192_i32 : i32 to vector<8x256xi32>
    %10 = arith.cmpi slt, %2, %9 : vector<8x256xi32>
    %c8_i32 = arith.constant 8 : i32
    %11 = vector.broadcast %c8_i32 : i32 to vector<8x256xi32>
    %12 = arith.cmpi sge, %4, %11 : vector<8x256xi32>
    %c56_i32 = arith.constant 56 : i32
    %13 = vector.broadcast %c56_i32 : i32 to vector<8x256xi32>
    %14 = arith.cmpi slt, %4, %13 : vector<8x256xi32>
    %c1_i32 = arith.constant 1 : i32
    %15 = vector.broadcast %c1_i32 : i32 to vector<8x256xi32>
    %16 = arith.cmpi sge, %6, %15 : vector<8x256xi32>
    %c7_i32_2 = arith.constant 7 : i32
    %17 = vector.broadcast %c7_i32_2 : i32 to vector<8x256xi32>
    %18 = arith.cmpi slt, %6, %17 : vector<8x256xi32>
    %19 = vector.extract_strided_slice %1 {offsets = [0, 183], sizes = [8, 73], strides = [1, 1]} : vector<8x256xf32> to vector<8x73xf32>
    %20 = vector.extract_strided_slice %1 {offsets = [0, 0], sizes = [8, 183], strides = [1, 1]} : vector<8x256xf32> to vector<8x183xf32>
    %21 = tpu.concatenate %19, %20 in 1 : vector<8x73xf32>, vector<8x183xf32> -> vector<8x256xf32>
    %22 = arith.andi %8, %12 : vector<8x256xi1>
    %23 = arith.andi %22, %16 : vector<8x256xi1>
    %cst = arith.constant 0.000000e+00 : f32
    %24 = vector.broadcast %cst : f32 to vector<8x256xf32>
    %25 = arith.select %23, %21, %24 : vector<8x256xi1>, vector<8x256xf32>
    %c0_3 = arith.constant 0 : index
    %c0_4 = arith.constant 0 : index
    %26 = vector.load %arg9[%c0_3, %c0_4] : memref<216x256xf32, #tpu.memory_space<vmem>>, vector<8x256xf32>
    tpu.vector_store %arg9[%c0_3, %c0_4], %25 {strides = array<i32>} : memref<216x256xf32, #tpu.memory_space<vmem>>, vector<8x256xf32>,
    %27 = vector.extract_strided_slice %1 {offsets = [0, 184], sizes = [8, 72], strides = [1, 1]} : vector<8x256xf32> to vector<8x72xf32>
    %28 = vector.extract_strided_slice %1 {offsets = [0, 0], sizes = [8, 184], strides = [1, 1]} : vector<8x256xf32> to vector<8x184xf32>
    %29 = tpu.concatenate %27, %28 in 1 : vector<8x72xf32>, vector<8x184xf32> -> vector<8x256xf32>
    %30 = arith.andi %8, %12 : vector<8x256xi1>
    %cst_5 = arith.constant 0.000000e+00 : f32
    %31 = vector.broadcast %cst_5 : f32 to vector<8x256xf32>
    %32 = arith.select %30, %29, %31 : vector<8x256xi1>, vector<8x256xf32>
    %c8 = arith.constant 8 : index
    %c0_6 = arith.constant 0 : index
    %33 = vector.load %arg9[%c8, %c0_6] : memref<216x256xf32, #tpu.memory_space<vmem>>, vector<8x256xf32>
    tpu.vector_store %arg9[%c8, %c0_6], %32 {strides = array<i32>} : memref<216x256xf32, #tpu.memory_space<vmem>>, vector<8x256xf32>,
    %34 = vector.extract_strided_slice %1 {offsets = [0, 185], sizes = [8, 71], strides = [1, 1]} : vector<8x256xf32> to vector<8x71xf32>
    %35 = vector.extract_strided_slice %1 {offsets = [0, 0], sizes = [8, 185], strides = [1, 1]} : vector<8x256xf32> to vector<8x185xf32>
    %36 = tpu.concatenate %34, %35 in 1 : vector<8x71xf32>, vector<8x185xf32> -> vector<8x256xf32>
    %37 = arith.andi %8, %12 : vector<8x256xi1>
    %38 = arith.andi %37, %18 : vector<8x256xi1>
    %cst_7 = arith.constant 0.000000e+00 : f32
    %39 = vector.broadcast %cst_7 : f32 to vector<8x256xf32>
    %40 = arith.select %38, %36, %39 : vector<8x256xi1>, vector<8x256xf32>
    %c16 = arith.constant 16 : index
    %c0_8 = arith.constant 0 : index
    %41 = vector.load %arg9[%c16, %c0_8] : memref<216x256xf32, #tpu.memory_space<vmem>>, vector<8x256xf32>
    tpu.vector_store %arg9[%c16, %c0_8], %40 {strides = array<i32>} : memref<216x256xf32, #tpu.memory_space<vmem>>, vector<8x256xf32>,
    %42 = vector.extract_strided_slice %1 {offsets = [0, 191], sizes = [8, 65], strides = [1, 1]} : vector<8x256xf32> to vector<8x65xf32>
    %43 = vector.extract_strided_slice %1 {offsets = [0, 0], sizes = [8, 191], strides = [1, 1]} : vector<8x256xf32> to vector<8x191xf32>
    %44 = tpu.concatenate %42, %43 in 1 : vector<8x65xf32>, vector<8x191xf32> -> vector<8x256xf32>
    %45 = arith.andi %8, %16 : vector<8x256xi1>
    %cst_9 = arith.constant 0.000000e+00 : f32
    %46 = vector.broadcast %cst_9 : f32 to vector<8x256xf32>
    %47 = arith.select %45, %44, %46 : vector<8x256xi1>, vector<8x256xf32>
    %c24 = arith.constant 24 : index
    %c0_10 = arith.constant 0 : index
    %48 = vector.load %arg9[%c24, %c0_10] : memref<216x256xf32, #tpu.memory_space<vmem>>, vector<8x256xf32>
    tpu.vector_store %arg9[%c24, %c0_10], %47 {strides = array<i32>} : memref<216x256xf32, #tpu.memory_space<vmem>>, vector<8x256xf32>,
    %49 = vector.extract_strided_slice %1 {offsets = [0, 192], sizes = [8, 64], strides = [1, 1]} : vector<8x256xf32> to vector<8x64xf32>
    %50 = vector.extract_strided_slice %1 {offsets = [0, 0], sizes = [8, 192], strides = [1, 1]} : vector<8x256xf32> to vector<8x192xf32>
    %51 = tpu.concatenate %49, %50 in 1 : vector<8x64xf32>, vector<8x192xf32> -> vector<8x256xf32>
    %cst_11 = arith.constant 0.000000e+00 : f32
    %52 = vector.broadcast %cst_11 : f32 to vector<8x256xf32>
    %53 = arith.select %8, %51, %52 : vector<8x256xi1>, vector<8x256xf32>
    %c32 = arith.constant 32 : index
    %c0_12 = arith.constant 0 : index
    %54 = vector.load %arg9[%c32, %c0_12] : memref<216x256xf32, #tpu.memory_space<vmem>>, vector<8x256xf32>
    tpu.vector_store %arg9[%c32, %c0_12], %53 {strides = array<i32>} : memref<216x256xf32, #tpu.memory_space<vmem>>, vector<8x256xf32>,
    %55 = vector.extract_strided_slice %1 {offsets = [0, 193], sizes = [8, 63], strides = [1, 1]} : vector<8x256xf32> to vector<8x63xf32>
    %56 = vector.extract_strided_slice %1 {offsets = [0, 0], sizes = [8, 193], strides = [1, 1]} : vector<8x256xf32> to vector<8x193xf32>
    %57 = tpu.concatenate %55, %56 in 1 : vector<8x63xf32>, vector<8x193xf32> -> vector<8x256xf32>
    %58 = arith.andi %8, %18 : vector<8x256xi1>
    %cst_13 = arith.constant 0.000000e+00 : f32
    %59 = vector.broadcast %cst_13 : f32 to vector<8x256xf32>
    %60 = arith.select %58, %57, %59 : vector<8x256xi1>, vector<8x256xf32>
    %c40 = arith.constant 40 : index
    %c0_14 = arith.constant 0 : index
    %61 = vector.load %arg9[%c40, %c0_14] : memref<216x256xf32, #tpu.memory_space<vmem>>, vector<8x256xf32>
    tpu.vector_store %arg9[%c40, %c0_14], %60 {strides = array<i32>} : memref<216x256xf32, #tpu.memory_space<vmem>>, vector<8x256xf32>,
    %62 = vector.extract_strided_slice %1 {offsets = [0, 199], sizes = [8, 57], strides = [1, 1]} : vector<8x256xf32> to vector<8x57xf32>
    %63 = vector.extract_strided_slice %1 {offsets = [0, 0], sizes = [8, 199], strides = [1, 1]} : vector<8x256xf32> to vector<8x199xf32>
    %64 = tpu.concatenate %62, %63 in 1 : vector<8x57xf32>, vector<8x199xf32> -> vector<8x256xf32>
    %65 = arith.andi %8, %14 : vector<8x256xi1>
    %66 = arith.andi %65, %16 : vector<8x256xi1>
    %cst_15 = arith.constant 0.000000e+00 : f32
    %67 = vector.broadcast %cst_15 : f32 to vector<8x256xf32>
    %68 = arith.select %66, %64, %67 : vector<8x256xi1>, vector<8x256xf32>
    %c48 = arith.constant 48 : index
    %c0_16 = arith.constant 0 : index
    %69 = vector.load %arg9[%c48, %c0_16] : memref<216x256xf32, #tpu.memory_space<vmem>>, vector<8x256xf32>
    tpu.vector_store %arg9[%c48, %c0_16], %68 {strides = array<i32>} : memref<216x256xf32, #tpu.memory_space<vmem>>, vector<8x256xf32>,
    %70 = vector.extract_strided_slice %1 {offsets = [0, 200], sizes = [8, 56], strides = [1, 1]} : vector<8x256xf32> to vector<8x56xf32>
    %71 = vector.extract_strided_slice %1 {offsets = [0, 0], sizes = [8, 200], strides = [1, 1]} : vector<8x256xf32> to vector<8x200xf32>
    %72 = tpu.concatenate %70, %71 in 1 : vector<8x56xf32>, vector<8x200xf32> -> vector<8x256xf32>
    %73 = arith.andi %8, %14 : vector<8x256xi1>
    %cst_17 = arith.constant 0.000000e+00 : f32
    %74 = vector.broadcast %cst_17 : f32 to vector<8x256xf32>
    %75 = arith.select %73, %72, %74 : vector<8x256xi1>, vector<8x256xf32>
    %c56 = arith.constant 56 : index
    %c0_18 = arith.constant 0 : index
    %76 = vector.load %arg9[%c56, %c0_18] : memref<216x256xf32, #tpu.memory_space<vmem>>, vector<8x256xf32>
    tpu.vector_store %arg9[%c56, %c0_18], %75 {strides = array<i32>} : memref<216x256xf32, #tpu.memory_space<vmem>>, vector<8x256xf32>,
    %77 = vector.extract_strided_slice %1 {offsets = [0, 201], sizes = [8, 55], strides = [1, 1]} : vector<8x256xf32> to vector<8x55xf32>
    %78 = vector.extract_strided_slice %1 {offsets = [0, 0], sizes = [8, 201], strides = [1, 1]} : vector<8x256xf32> to vector<8x201xf32>
    %79 = tpu.concatenate %77, %78 in 1 : vector<8x55xf32>, vector<8x201xf32> -> vector<8x256xf32>
    %80 = arith.andi %8, %14 : vector<8x256xi1>
    %81 = arith.andi %80, %18 : vector<8x256xi1>
    %cst_19 = arith.constant 0.000000e+00 : f32
    %82 = vector.broadcast %cst_19 : f32 to vector<8x256xf32>
    %83 = arith.select %81, %79, %82 : vector<8x256xi1>, vector<8x256xf32>
    %c64 = arith.constant 64 : index
    %c0_20 = arith.constant 0 : index
    %84 = vector.load %arg9[%c64, %c0_20] : memref<216x256xf32, #tpu.memory_space<vmem>>, vector<8x256xf32>
    tpu.vector_store %arg9[%c64, %c0_20], %83 {strides = array<i32>} : memref<216x256xf32, #tpu.memory_space<vmem>>, vector<8x256xf32>,
    %85 = vector.extract_strided_slice %1 {offsets = [0, 247], sizes = [8, 9], strides = [1, 1]} : vector<8x256xf32> to vector<8x9xf32>
    %86 = vector.extract_strided_slice %1 {offsets = [0, 0], sizes = [8, 247], strides = [1, 1]} : vector<8x256xf32> to vector<8x247xf32>
    %87 = tpu.concatenate %85, %86 in 1 : vector<8x9xf32>, vector<8x247xf32> -> vector<8x256xf32>
    %88 = arith.andi %12, %16 : vector<8x256xi1>
    %cst_21 = arith.constant 0.000000e+00 : f32
    %89 = vector.broadcast %cst_21 : f32 to vector<8x256xf32>
    %90 = arith.select %88, %87, %89 : vector<8x256xi1>, vector<8x256xf32>
    %c72 = arith.constant 72 : index
    %c0_22 = arith.constant 0 : index
    %91 = vector.load %arg9[%c72, %c0_22] : memref<216x256xf32, #tpu.memory_space<vmem>>, vector<8x256xf32>
    tpu.vector_store %arg9[%c72, %c0_22], %90 {strides = array<i32>} : memref<216x256xf32, #tpu.memory_space<vmem>>, vector<8x256xf32>,
    %92 = vector.extract_strided_slice %1 {offsets = [0, 248], sizes = [8, 8], strides = [1, 1]} : vector<8x256xf32> to vector<8x8xf32>
    %93 = vector.extract_strided_slice %1 {offsets = [0, 0], sizes = [8, 248], strides = [1, 1]} : vector<8x256xf32> to vector<8x248xf32>
    %94 = tpu.concatenate %92, %93 in 1 : vector<8x8xf32>, vector<8x248xf32> -> vector<8x256xf32>
    %cst_23 = arith.constant 0.000000e+00 : f32
    %95 = vector.broadcast %cst_23 : f32 to vector<8x256xf32>
    %96 = arith.select %12, %94, %95 : vector<8x256xi1>, vector<8x256xf32>
    %c80 = arith.constant 80 : index
    %c0_24 = arith.constant 0 : index
    %97 = vector.load %arg9[%c80, %c0_24] : memref<216x256xf32, #tpu.memory_space<vmem>>, vector<8x256xf32>
    tpu.vector_store %arg9[%c80, %c0_24], %96 {strides = array<i32>} : memref<216x256xf32, #tpu.memory_space<vmem>>, vector<8x256xf32>,
    %98 = vector.extract_strided_slice %1 {offsets = [0, 249], sizes = [8, 7], strides = [1, 1]} : vector<8x256xf32> to vector<8x7xf32>
    %99 = vector.extract_strided_slice %1 {offsets = [0, 0], sizes = [8, 249], strides = [1, 1]} : vector<8x256xf32> to vector<8x249xf32>
    %100 = tpu.concatenate %98, %99 in 1 : vector<8x7xf32>, vector<8x249xf32> -> vector<8x256xf32>
    %101 = arith.andi %12, %18 : vector<8x256xi1>
    %cst_25 = arith.constant 0.000000e+00 : f32
    %102 = vector.broadcast %cst_25 : f32 to vector<8x256xf32>
    %103 = arith.select %101, %100, %102 : vector<8x256xi1>, vector<8x256xf32>
    %c88 = arith.constant 88 : index
    %c0_26 = arith.constant 0 : index
    %104 = vector.load %arg9[%c88, %c0_26] : memref<216x256xf32, #tpu.memory_space<vmem>>, vector<8x256xf32>
    tpu.vector_store %arg9[%c88, %c0_26], %103 {strides = array<i32>} : memref<216x256xf32, #tpu.memory_space<vmem>>, vector<8x256xf32>,
    %105 = vector.extract_strided_slice %1 {offsets = [0, 255], sizes = [8, 1], strides = [1, 1]} : vector<8x256xf32> to vector<8x1xf32>
    %106 = vector.extract_strided_slice %1 {offsets = [0, 0], sizes = [8, 255], strides = [1, 1]} : vector<8x256xf32> to vector<8x255xf32>
    %107 = tpu.concatenate %105, %106 in 1 : vector<8x1xf32>, vector<8x255xf32> -> vector<8x256xf32>
    %cst_27 = arith.constant 0.000000e+00 : f32
    %108 = vector.broadcast %cst_27 : f32 to vector<8x256xf32>
    %109 = arith.select %16, %107, %108 : vector<8x256xi1>, vector<8x256xf32>
    %c96 = arith.constant 96 : index
    %c0_28 = arith.constant 0 : index
    %110 = vector.load %arg9[%c96, %c0_28] : memref<216x256xf32, #tpu.memory_space<vmem>>, vector<8x256xf32>
    tpu.vector_store %arg9[%c96, %c0_28], %109 {strides = array<i32>} : memref<216x256xf32, #tpu.memory_space<vmem>>, vector<8x256xf32>,
    %c104 = arith.constant 104 : index
    %c0_29 = arith.constant 0 : index
    %111 = vector.load %arg9[%c104, %c0_29] : memref<216x256xf32, #tpu.memory_space<vmem>>, vector<8x256xf32>
    tpu.vector_store %arg9[%c104, %c0_29], %1 {strides = array<i32>} : memref<216x256xf32, #tpu.memory_space<vmem>>, vector<8x256xf32>,
    %112 = vector.extract_strided_slice %1 {offsets = [0, 1], sizes = [8, 255], strides = [1, 1]} : vector<8x256xf32> to vector<8x255xf32>
    %113 = vector.extract_strided_slice %1 {offsets = [0, 0], sizes = [8, 1], strides = [1, 1]} : vector<8x256xf32> to vector<8x1xf32>
    %114 = tpu.concatenate %112, %113 in 1 : vector<8x255xf32>, vector<8x1xf32> -> vector<8x256xf32>
    %cst_30 = arith.constant 0.000000e+00 : f32
    %115 = vector.broadcast %cst_30 : f32 to vector<8x256xf32>
    %116 = arith.select %18, %114, %115 : vector<8x256xi1>, vector<8x256xf32>
    %c112 = arith.constant 112 : index
    %c0_31 = arith.constant 0 : index
    %117 = vector.load %arg9[%c112, %c0_31] : memref<216x256xf32, #tpu.memory_space<vmem>>, vector<8x256xf32>
    tpu.vector_store %arg9[%c112, %c0_31], %116 {strides = array<i32>} : memref<216x256xf32, #tpu.memory_space<vmem>>, vector<8x256xf32>,
    %118 = vector.extract_strided_slice %1 {offsets = [0, 7], sizes = [8, 249], strides = [1, 1]} : vector<8x256xf32> to vector<8x249xf32>
    %119 = vector.extract_strided_slice %1 {offsets = [0, 0], sizes = [8, 7], strides = [1, 1]} : vector<8x256xf32> to vector<8x7xf32>
    %120 = tpu.concatenate %118, %119 in 1 : vector<8x249xf32>, vector<8x7xf32> -> vector<8x256xf32>
    %121 = arith.andi %14, %16 : vector<8x256xi1>
    %cst_32 = arith.constant 0.000000e+00 : f32
    %122 = vector.broadcast %cst_32 : f32 to vector<8x256xf32>
    %123 = arith.select %121, %120, %122 : vector<8x256xi1>, vector<8x256xf32>
    %c120 = arith.constant 120 : index
    %c0_33 = arith.constant 0 : index
    %124 = vector.load %arg9[%c120, %c0_33] : memref<216x256xf32, #tpu.memory_space<vmem>>, vector<8x256xf32>
    tpu.vector_store %arg9[%c120, %c0_33], %123 {strides = array<i32>} : memref<216x256xf32, #tpu.memory_space<vmem>>, vector<8x256xf32>,
    %125 = vector.extract_strided_slice %1 {offsets = [0, 8], sizes = [8, 248], strides = [1, 1]} : vector<8x256xf32> to vector<8x248xf32>
    %126 = vector.extract_strided_slice %1 {offsets = [0, 0], sizes = [8, 8], strides = [1, 1]} : vector<8x256xf32> to vector<8x8xf32>
    %127 = tpu.concatenate %125, %126 in 1 : vector<8x248xf32>, vector<8x8xf32> -> vector<8x256xf32>
    %cst_34 = arith.constant 0.000000e+00 : f32
    %128 = vector.broadcast %cst_34 : f32 to vector<8x256xf32>
    %129 = arith.select %14, %127, %128 : vector<8x256xi1>, vector<8x256xf32>
    %c128 = arith.constant 128 : index
    %c0_35 = arith.constant 0 : index
    %130 = vector.load %arg9[%c128, %c0_35] : memref<216x256xf32, #tpu.memory_space<vmem>>, vector<8x256xf32>
    tpu.vector_store %arg9[%c128, %c0_35], %129 {strides = array<i32>} : memref<216x256xf32, #tpu.memory_space<vmem>>, vector<8x256xf32>,
    %131 = vector.extract_strided_slice %1 {offsets = [0, 9], sizes = [8, 247], strides = [1, 1]} : vector<8x256xf32> to vector<8x247xf32>
    %132 = vector.extract_strided_slice %1 {offsets = [0, 0], sizes = [8, 9], strides = [1, 1]} : vector<8x256xf32> to vector<8x9xf32>
    %133 = tpu.concatenate %131, %132 in 1 : vector<8x247xf32>, vector<8x9xf32> -> vector<8x256xf32>
    %134 = arith.andi %14, %18 : vector<8x256xi1>
    %cst_36 = arith.constant 0.000000e+00 : f32
    %135 = vector.broadcast %cst_36 : f32 to vector<8x256xf32>
    %136 = arith.select %134, %133, %135 : vector<8x256xi1>, vector<8x256xf32>
    %c136 = arith.constant 136 : index
    %c0_37 = arith.constant 0 : index
    %137 = vector.load %arg9[%c136, %c0_37] : memref<216x256xf32, #tpu.memory_space<vmem>>, vector<8x256xf32>
    tpu.vector_store %arg9[%c136, %c0_37], %136 {strides = array<i32>} : memref<216x256xf32, #tpu.memory_space<vmem>>, vector<8x256xf32>,
    %138 = vector.extract_strided_slice %1 {offsets = [0, 55], sizes = [8, 201], strides = [1, 1]} : vector<8x256xf32> to vector<8x201xf32>
    %139 = vector.extract_strided_slice %1 {offsets = [0, 0], sizes = [8, 55], strides = [1, 1]} : vector<8x256xf32> to vector<8x55xf32>
    %140 = tpu.concatenate %138, %139 in 1 : vector<8x201xf32>, vector<8x55xf32> -> vector<8x256xf32>
    %141 = arith.andi %10, %12 : vector<8x256xi1>
    %142 = arith.andi %141, %16 : vector<8x256xi1>
    %cst_38 = arith.constant 0.000000e+00 : f32
    %143 = vector.broadcast %cst_38 : f32 to vector<8x256xf32>
    %144 = arith.select %142, %140, %143 : vector<8x256xi1>, vector<8x256xf32>
    %c144 = arith.constant 144 : index
    %c0_39 = arith.constant 0 : index
    %145 = vector.load %arg9[%c144, %c0_39] : memref<216x256xf32, #tpu.memory_space<vmem>>, vector<8x256xf32>
    tpu.vector_store %arg9[%c144, %c0_39], %144 {strides = array<i32>} : memref<216x256xf32, #tpu.memory_space<vmem>>, vector<8x256xf32>,
    %146 = vector.extract_strided_slice %1 {offsets = [0, 56], sizes = [8, 200], strides = [1, 1]} : vector<8x256xf32> to vector<8x200xf32>
    %147 = vector.extract_strided_slice %1 {offsets = [0, 0], sizes = [8, 56], strides = [1, 1]} : vector<8x256xf32> to vector<8x56xf32>
    %148 = tpu.concatenate %146, %147 in 1 : vector<8x200xf32>, vector<8x56xf32> -> vector<8x256xf32>
    %149 = arith.andi %10, %12 : vector<8x256xi1>
    %cst_40 = arith.constant 0.000000e+00 : f32
    %150 = vector.broadcast %cst_40 : f32 to vector<8x256xf32>
    %151 = arith.select %149, %148, %150 : vector<8x256xi1>, vector<8x256xf32>
    %c152 = arith.constant 152 : index
    %c0_41 = arith.constant 0 : index
    %152 = vector.load %arg9[%c152, %c0_41] : memref<216x256xf32, #tpu.memory_space<vmem>>, vector<8x256xf32>
    tpu.vector_store %arg9[%c152, %c0_41], %151 {strides = array<i32>} : memref<216x256xf32, #tpu.memory_space<vmem>>, vector<8x256xf32>,
    %153 = vector.extract_strided_slice %1 {offsets = [0, 57], sizes = [8, 199], strides = [1, 1]} : vector<8x256xf32> to vector<8x199xf32>
    %154 = vector.extract_strided_slice %1 {offsets = [0, 0], sizes = [8, 57], strides = [1, 1]} : vector<8x256xf32> to vector<8x57xf32>
    %155 = tpu.concatenate %153, %154 in 1 : vector<8x199xf32>, vector<8x57xf32> -> vector<8x256xf32>
    %156 = arith.andi %10, %12 : vector<8x256xi1>
    %157 = arith.andi %156, %18 : vector<8x256xi1>
    %cst_42 = arith.constant 0.000000e+00 : f32
    %158 = vector.broadcast %cst_42 : f32 to vector<8x256xf32>
    %159 = arith.select %157, %155, %158 : vector<8x256xi1>, vector<8x256xf32>
    %c160 = arith.constant 160 : index
    %c0_43 = arith.constant 0 : index
    %160 = vector.load %arg9[%c160, %c0_43] : memref<216x256xf32, #tpu.memory_space<vmem>>, vector<8x256xf32>
    tpu.vector_store %arg9[%c160, %c0_43], %159 {strides = array<i32>} : memref<216x256xf32, #tpu.memory_space<vmem>>, vector<8x256xf32>,
    %161 = vector.extract_strided_slice %1 {offsets = [0, 63], sizes = [8, 193], strides = [1, 1]} : vector<8x256xf32> to vector<8x193xf32>
    %162 = vector.extract_strided_slice %1 {offsets = [0, 0], sizes = [8, 63], strides = [1, 1]} : vector<8x256xf32> to vector<8x63xf32>
    %163 = tpu.concatenate %161, %162 in 1 : vector<8x193xf32>, vector<8x63xf32> -> vector<8x256xf32>
    %164 = arith.andi %10, %16 : vector<8x256xi1>
    %cst_44 = arith.constant 0.000000e+00 : f32
    %165 = vector.broadcast %cst_44 : f32 to vector<8x256xf32>
    %166 = arith.select %164, %163, %165 : vector<8x256xi1>, vector<8x256xf32>
    %c168 = arith.constant 168 : index
    %c0_45 = arith.constant 0 : index
    %167 = vector.load %arg9[%c168, %c0_45] : memref<216x256xf32, #tpu.memory_space<vmem>>, vector<8x256xf32>
    tpu.vector_store %arg9[%c168, %c0_45], %166 {strides = array<i32>} : memref<216x256xf32, #tpu.memory_space<vmem>>, vector<8x256xf32>,
    %168 = vector.extract_strided_slice %1 {offsets = [0, 64], sizes = [8, 192], strides = [1, 1]} : vector<8x256xf32> to vector<8x192xf32>
    %169 = vector.extract_strided_slice %1 {offsets = [0, 0], sizes = [8, 64], strides = [1, 1]} : vector<8x256xf32> to vector<8x64xf32>
    %170 = tpu.concatenate %168, %169 in 1 : vector<8x192xf32>, vector<8x64xf32> -> vector<8x256xf32>
    %cst_46 = arith.constant 0.000000e+00 : f32
    %171 = vector.broadcast %cst_46 : f32 to vector<8x256xf32>
    %172 = arith.select %10, %170, %171 : vector<8x256xi1>, vector<8x256xf32>
    %c176 = arith.constant 176 : index
    %c0_47 = arith.constant 0 : index
    %173 = vector.load %arg9[%c176, %c0_47] : memref<216x256xf32, #tpu.memory_space<vmem>>, vector<8x256xf32>
    tpu.vector_store %arg9[%c176, %c0_47], %172 {strides = array<i32>} : memref<216x256xf32, #tpu.memory_space<vmem>>, vector<8x256xf32>,
    %174 = vector.extract_strided_slice %1 {offsets = [0, 65], sizes = [8, 191], strides = [1, 1]} : vector<8x256xf32> to vector<8x191xf32>
    %175 = vector.extract_strided_slice %1 {offsets = [0, 0], sizes = [8, 65], strides = [1, 1]} : vector<8x256xf32> to vector<8x65xf32>
    %176 = tpu.concatenate %174, %175 in 1 : vector<8x191xf32>, vector<8x65xf32> -> vector<8x256xf32>
    %177 = arith.andi %10, %18 : vector<8x256xi1>
    %cst_48 = arith.constant 0.000000e+00 : f32
    %178 = vector.broadcast %cst_48 : f32 to vector<8x256xf32>
    %179 = arith.select %177, %176, %178 : vector<8x256xi1>, vector<8x256xf32>
    %c184 = arith.constant 184 : index
    %c0_49 = arith.constant 0 : index
    %180 = vector.load %arg9[%c184, %c0_49] : memref<216x256xf32, #tpu.memory_space<vmem>>, vector<8x256xf32>
    tpu.vector_store %arg9[%c184, %c0_49], %179 {strides = array<i32>} : memref<216x256xf32, #tpu.memory_space<vmem>>, vector<8x256xf32>,
    %181 = vector.extract_strided_slice %1 {offsets = [0, 71], sizes = [8, 185], strides = [1, 1]} : vector<8x256xf32> to vector<8x185xf32>
    %182 = vector.extract_strided_slice %1 {offsets = [0, 0], sizes = [8, 71], strides = [1, 1]} : vector<8x256xf32> to vector<8x71xf32>
    %183 = tpu.concatenate %181, %182 in 1 : vector<8x185xf32>, vector<8x71xf32> -> vector<8x256xf32>
    %184 = arith.andi %10, %14 : vector<8x256xi1>
    %185 = arith.andi %184, %16 : vector<8x256xi1>
    %cst_50 = arith.constant 0.000000e+00 : f32
    %186 = vector.broadcast %cst_50 : f32 to vector<8x256xf32>
    %187 = arith.select %185, %183, %186 : vector<8x256xi1>, vector<8x256xf32>
    %c192 = arith.constant 192 : index
    %c0_51 = arith.constant 0 : index
    %188 = vector.load %arg9[%c192, %c0_51] : memref<216x256xf32, #tpu.memory_space<vmem>>, vector<8x256xf32>
    tpu.vector_store %arg9[%c192, %c0_51], %187 {strides = array<i32>} : memref<216x256xf32, #tpu.memory_space<vmem>>, vector<8x256xf32>,
    %189 = vector.extract_strided_slice %1 {offsets = [0, 72], sizes = [8, 184], strides = [1, 1]} : vector<8x256xf32> to vector<8x184xf32>
    %190 = vector.extract_strided_slice %1 {offsets = [0, 0], sizes = [8, 72], strides = [1, 1]} : vector<8x256xf32> to vector<8x72xf32>
    %191 = tpu.concatenate %189, %190 in 1 : vector<8x184xf32>, vector<8x72xf32> -> vector<8x256xf32>
    %192 = arith.andi %10, %14 : vector<8x256xi1>
    %cst_52 = arith.constant 0.000000e+00 : f32
    %193 = vector.broadcast %cst_52 : f32 to vector<8x256xf32>
    %194 = arith.select %192, %191, %193 : vector<8x256xi1>, vector<8x256xf32>
    %c200 = arith.constant 200 : index
    %c0_53 = arith.constant 0 : index
    %195 = vector.load %arg9[%c200, %c0_53] : memref<216x256xf32, #tpu.memory_space<vmem>>, vector<8x256xf32>
    tpu.vector_store %arg9[%c200, %c0_53], %194 {strides = array<i32>} : memref<216x256xf32, #tpu.memory_space<vmem>>, vector<8x256xf32>,
    %196 = vector.extract_strided_slice %1 {offsets = [0, 73], sizes = [8, 183], strides = [1, 1]} : vector<8x256xf32> to vector<8x183xf32>
    %197 = vector.extract_strided_slice %1 {offsets = [0, 0], sizes = [8, 73], strides = [1, 1]} : vector<8x256xf32> to vector<8x73xf32>
    %198 = tpu.concatenate %196, %197 in 1 : vector<8x183xf32>, vector<8x73xf32> -> vector<8x256xf32>
    %199 = arith.andi %10, %14 : vector<8x256xi1>
    %200 = arith.andi %199, %18 : vector<8x256xi1>
    %cst_54 = arith.constant 0.000000e+00 : f32
    %201 = vector.broadcast %cst_54 : f32 to vector<8x256xf32>
    %202 = arith.select %200, %198, %201 : vector<8x256xi1>, vector<8x256xf32>
    %c208 = arith.constant 208 : index
    %c0_55 = arith.constant 0 : index
    %203 = vector.load %arg9[%c208, %c0_55] : memref<216x256xf32, #tpu.memory_space<vmem>>, vector<8x256xf32>
    tpu.vector_store %arg9[%c208, %c0_55], %202 {strides = array<i32>} : memref<216x256xf32, #tpu.memory_space<vmem>>, vector<8x256xf32>,
    %c0_56 = arith.constant 0 : index
    %c0_57 = arith.constant 0 : index
    %204 = vector.load %arg2[%c0_56, %c0_57] : memref<8x216xbf16, #tpu.memory_space<vmem>>, vector<8x216xbf16>
    %c0_58 = arith.constant 0 : index
    %c0_59 = arith.constant 0 : index
    %205 = vector.load %arg9[%c0_58, %c0_59] : memref<216x256xf32, #tpu.memory_space<vmem>>, vector<216x256xf32>
    %206 = arith.truncf %205 : vector<216x256xf32> to vector<216x256xbf16>
    %cst_60 = arith.constant dense<0.000000e+00> : vector<8x256xf32>
    %207 = tpu.matmul %204, %206, %cst_60 {dimension_numbers = #tpu.dot_dimension_numbers<[1], [0], [0], [1], [0, 0, 1, 1], [], []>} : vector<8x216xbf16>, vector<216x256xbf16>, vector<8x256xf32> -> vector<8x256xf32>
    %c0_61 = arith.constant 0 : index
    %c0_62 = arith.constant 0 : index
    %208 = vector.load %arg4[%c0_61, %c0_62] : memref<8x1xf32, #tpu.memory_space<vmem>>, vector<8x1xf32>
    %209 = vector.broadcast %208 : vector<8x1xf32> to vector<8x256xf32>
    %210 = arith.mulf %207, %209 : vector<8x256xf32>
    %c0_63 = arith.constant 0 : index
    %c0_64 = arith.constant 0 : index
    %211 = vector.load %arg5[%c0_63, %c0_64] : memref<8x1xf32, #tpu.memory_space<vmem>>, vector<8x1xf32>
    %212 = vector.broadcast %211 : vector<8x1xf32> to vector<8x256xf32>
    %213 = arith.addf %210, %212 : vector<8x256xf32>
    %cst_65 = arith.constant 0.000000e+00 : f32
    %214 = vector.broadcast %cst_65 : f32 to vector<8x256xf32>
    %215 = arith.maximumf %213, %214 : vector<8x256xf32>
    %216 = vector.extract_strided_slice %215 {offsets = [0, 183], sizes = [8, 73], strides = [1, 1]} : vector<8x256xf32> to vector<8x73xf32>
    %217 = vector.extract_strided_slice %215 {offsets = [0, 0], sizes = [8, 183], strides = [1, 1]} : vector<8x256xf32> to vector<8x183xf32>
    %218 = tpu.concatenate %216, %217 in 1 : vector<8x73xf32>, vector<8x183xf32> -> vector<8x256xf32>
    %219 = arith.andi %8, %12 : vector<8x256xi1>
    %220 = arith.andi %219, %16 : vector<8x256xi1>
    %cst_66 = arith.constant 0.000000e+00 : f32
    %221 = vector.broadcast %cst_66 : f32 to vector<8x256xf32>
    %222 = arith.select %220, %218, %221 : vector<8x256xi1>, vector<8x256xf32>
    %c0_67 = arith.constant 0 : index
    %c0_68 = arith.constant 0 : index
    %223 = vector.load %arg9[%c0_67, %c0_68] : memref<216x256xf32, #tpu.memory_space<vmem>>, vector<8x256xf32>
    tpu.vector_store %arg9[%c0_67, %c0_68], %222 {strides = array<i32>} : memref<216x256xf32, #tpu.memory_space<vmem>>, vector<8x256xf32>,
    %224 = vector.extract_strided_slice %215 {offsets = [0, 184], sizes = [8, 72], strides = [1, 1]} : vector<8x256xf32> to vector<8x72xf32>
    %225 = vector.extract_strided_slice %215 {offsets = [0, 0], sizes = [8, 184], strides = [1, 1]} : vector<8x256xf32> to vector<8x184xf32>
    %226 = tpu.concatenate %224, %225 in 1 : vector<8x72xf32>, vector<8x184xf32> -> vector<8x256xf32>
    %227 = arith.andi %8, %12 : vector<8x256xi1>
    %cst_69 = arith.constant 0.000000e+00 : f32
    %228 = vector.broadcast %cst_69 : f32 to vector<8x256xf32>
    %229 = arith.select %227, %226, %228 : vector<8x256xi1>, vector<8x256xf32>
    %c8_70 = arith.constant 8 : index
    %c0_71 = arith.constant 0 : index
    %230 = vector.load %arg9[%c8_70, %c0_71] : memref<216x256xf32, #tpu.memory_space<vmem>>, vector<8x256xf32>
    tpu.vector_store %arg9[%c8_70, %c0_71], %229 {strides = array<i32>} : memref<216x256xf32, #tpu.memory_space<vmem>>, vector<8x256xf32>,
    %231 = vector.extract_strided_slice %215 {offsets = [0, 185], sizes = [8, 71], strides = [1, 1]} : vector<8x256xf32> to vector<8x71xf32>
    %232 = vector.extract_strided_slice %215 {offsets = [0, 0], sizes = [8, 185], strides = [1, 1]} : vector<8x256xf32> to vector<8x185xf32>
    %233 = tpu.concatenate %231, %232 in 1 : vector<8x71xf32>, vector<8x185xf32> -> vector<8x256xf32>
    %234 = arith.andi %8, %12 : vector<8x256xi1>
    %235 = arith.andi %234, %18 : vector<8x256xi1>
    %cst_72 = arith.constant 0.000000e+00 : f32
    %236 = vector.broadcast %cst_72 : f32 to vector<8x256xf32>
    %237 = arith.select %235, %233, %236 : vector<8x256xi1>, vector<8x256xf32>
    %c16_73 = arith.constant 16 : index
    %c0_74 = arith.constant 0 : index
    %238 = vector.load %arg9[%c16_73, %c0_74] : memref<216x256xf32, #tpu.memory_space<vmem>>, vector<8x256xf32>
    tpu.vector_store %arg9[%c16_73, %c0_74], %237 {strides = array<i32>} : memref<216x256xf32, #tpu.memory_space<vmem>>, vector<8x256xf32>,
    %239 = vector.extract_strided_slice %215 {offsets = [0, 191], sizes = [8, 65], strides = [1, 1]} : vector<8x256xf32> to vector<8x65xf32>
    %240 = vector.extract_strided_slice %215 {offsets = [0, 0], sizes = [8, 191], strides = [1, 1]} : vector<8x256xf32> to vector<8x191xf32>
    %241 = tpu.concatenate %239, %240 in 1 : vector<8x65xf32>, vector<8x191xf32> -> vector<8x256xf32>
    %242 = arith.andi %8, %16 : vector<8x256xi1>
    %cst_75 = arith.constant 0.000000e+00 : f32
    %243 = vector.broadcast %cst_75 : f32 to vector<8x256xf32>
    %244 = arith.select %242, %241, %243 : vector<8x256xi1>, vector<8x256xf32>
    %c24_76 = arith.constant 24 : index
    %c0_77 = arith.constant 0 : index
    %245 = vector.load %arg9[%c24_76, %c0_77] : memref<216x256xf32, #tpu.memory_space<vmem>>, vector<8x256xf32>
    tpu.vector_store %arg9[%c24_76, %c0_77], %244 {strides = array<i32>} : memref<216x256xf32, #tpu.memory_space<vmem>>, vector<8x256xf32>,
    %246 = vector.extract_strided_slice %215 {offsets = [0, 192], sizes = [8, 64], strides = [1, 1]} : vector<8x256xf32> to vector<8x64xf32>
    %247 = vector.extract_strided_slice %215 {offsets = [0, 0], sizes = [8, 192], strides = [1, 1]} : vector<8x256xf32> to vector<8x192xf32>
    %248 = tpu.concatenate %246, %247 in 1 : vector<8x64xf32>, vector<8x192xf32> -> vector<8x256xf32>
    %cst_78 = arith.constant 0.000000e+00 : f32
    %249 = vector.broadcast %cst_78 : f32 to vector<8x256xf32>
    %250 = arith.select %8, %248, %249 : vector<8x256xi1>, vector<8x256xf32>
    %c32_79 = arith.constant 32 : index
    %c0_80 = arith.constant 0 : index
    %251 = vector.load %arg9[%c32_79, %c0_80] : memref<216x256xf32, #tpu.memory_space<vmem>>, vector<8x256xf32>
    tpu.vector_store %arg9[%c32_79, %c0_80], %250 {strides = array<i32>} : memref<216x256xf32, #tpu.memory_space<vmem>>, vector<8x256xf32>,
    %252 = vector.extract_strided_slice %215 {offsets = [0, 193], sizes = [8, 63], strides = [1, 1]} : vector<8x256xf32> to vector<8x63xf32>
    %253 = vector.extract_strided_slice %215 {offsets = [0, 0], sizes = [8, 193], strides = [1, 1]} : vector<8x256xf32> to vector<8x193xf32>
    %254 = tpu.concatenate %252, %253 in 1 : vector<8x63xf32>, vector<8x193xf32> -> vector<8x256xf32>
    %255 = arith.andi %8, %18 : vector<8x256xi1>
    %cst_81 = arith.constant 0.000000e+00 : f32
    %256 = vector.broadcast %cst_81 : f32 to vector<8x256xf32>
    %257 = arith.select %255, %254, %256 : vector<8x256xi1>, vector<8x256xf32>
    %c40_82 = arith.constant 40 : index
    %c0_83 = arith.constant 0 : index
    %258 = vector.load %arg9[%c40_82, %c0_83] : memref<216x256xf32, #tpu.memory_space<vmem>>, vector<8x256xf32>
    tpu.vector_store %arg9[%c40_82, %c0_83], %257 {strides = array<i32>} : memref<216x256xf32, #tpu.memory_space<vmem>>, vector<8x256xf32>,
    %259 = vector.extract_strided_slice %215 {offsets = [0, 199], sizes = [8, 57], strides = [1, 1]} : vector<8x256xf32> to vector<8x57xf32>
    %260 = vector.extract_strided_slice %215 {offsets = [0, 0], sizes = [8, 199], strides = [1, 1]} : vector<8x256xf32> to vector<8x199xf32>
    %261 = tpu.concatenate %259, %260 in 1 : vector<8x57xf32>, vector<8x199xf32> -> vector<8x256xf32>
    %262 = arith.andi %8, %14 : vector<8x256xi1>
    %263 = arith.andi %262, %16 : vector<8x256xi1>
    %cst_84 = arith.constant 0.000000e+00 : f32
    %264 = vector.broadcast %cst_84 : f32 to vector<8x256xf32>
    %265 = arith.select %263, %261, %264 : vector<8x256xi1>, vector<8x256xf32>
    %c48_85 = arith.constant 48 : index
    %c0_86 = arith.constant 0 : index
    %266 = vector.load %arg9[%c48_85, %c0_86] : memref<216x256xf32, #tpu.memory_space<vmem>>, vector<8x256xf32>
    tpu.vector_store %arg9[%c48_85, %c0_86], %265 {strides = array<i32>} : memref<216x256xf32, #tpu.memory_space<vmem>>, vector<8x256xf32>,
    %267 = vector.extract_strided_slice %215 {offsets = [0, 200], sizes = [8, 56], strides = [1, 1]} : vector<8x256xf32> to vector<8x56xf32>
    %268 = vector.extract_strided_slice %215 {offsets = [0, 0], sizes = [8, 200], strides = [1, 1]} : vector<8x256xf32> to vector<8x200xf32>
    %269 = tpu.concatenate %267, %268 in 1 : vector<8x56xf32>, vector<8x200xf32> -> vector<8x256xf32>
    %270 = arith.andi %8, %14 : vector<8x256xi1>
    %cst_87 = arith.constant 0.000000e+00 : f32
    %271 = vector.broadcast %cst_87 : f32 to vector<8x256xf32>
    %272 = arith.select %270, %269, %271 : vector<8x256xi1>, vector<8x256xf32>
    %c56_88 = arith.constant 56 : index
    %c0_89 = arith.constant 0 : index
    %273 = vector.load %arg9[%c56_88, %c0_89] : memref<216x256xf32, #tpu.memory_space<vmem>>, vector<8x256xf32>
    tpu.vector_store %arg9[%c56_88, %c0_89], %272 {strides = array<i32>} : memref<216x256xf32, #tpu.memory_space<vmem>>, vector<8x256xf32>,
    %274 = vector.extract_strided_slice %215 {offsets = [0, 201], sizes = [8, 55], strides = [1, 1]} : vector<8x256xf32> to vector<8x55xf32>
    %275 = vector.extract_strided_slice %215 {offsets = [0, 0], sizes = [8, 201], strides = [1, 1]} : vector<8x256xf32> to vector<8x201xf32>
    %276 = tpu.concatenate %274, %275 in 1 : vector<8x55xf32>, vector<8x201xf32> -> vector<8x256xf32>
    %277 = arith.andi %8, %14 : vector<8x256xi1>
    %278 = arith.andi %277, %18 : vector<8x256xi1>
    %cst_90 = arith.constant 0.000000e+00 : f32
    %279 = vector.broadcast %cst_90 : f32 to vector<8x256xf32>
    %280 = arith.select %278, %276, %279 : vector<8x256xi1>, vector<8x256xf32>
    %c64_91 = arith.constant 64 : index
    %c0_92 = arith.constant 0 : index
    %281 = vector.load %arg9[%c64_91, %c0_92] : memref<216x256xf32, #tpu.memory_space<vmem>>, vector<8x256xf32>
    tpu.vector_store %arg9[%c64_91, %c0_92], %280 {strides = array<i32>} : memref<216x256xf32, #tpu.memory_space<vmem>>, vector<8x256xf32>,
    %282 = vector.extract_strided_slice %215 {offsets = [0, 247], sizes = [8, 9], strides = [1, 1]} : vector<8x256xf32> to vector<8x9xf32>
    %283 = vector.extract_strided_slice %215 {offsets = [0, 0], sizes = [8, 247], strides = [1, 1]} : vector<8x256xf32> to vector<8x247xf32>
    %284 = tpu.concatenate %282, %283 in 1 : vector<8x9xf32>, vector<8x247xf32> -> vector<8x256xf32>
    %285 = arith.andi %12, %16 : vector<8x256xi1>
    %cst_93 = arith.constant 0.000000e+00 : f32
    %286 = vector.broadcast %cst_93 : f32 to vector<8x256xf32>
    %287 = arith.select %285, %284, %286 : vector<8x256xi1>, vector<8x256xf32>
    %c72_94 = arith.constant 72 : index
    %c0_95 = arith.constant 0 : index
    %288 = vector.load %arg9[%c72_94, %c0_95] : memref<216x256xf32, #tpu.memory_space<vmem>>, vector<8x256xf32>
    tpu.vector_store %arg9[%c72_94, %c0_95], %287 {strides = array<i32>} : memref<216x256xf32, #tpu.memory_space<vmem>>, vector<8x256xf32>,
    %289 = vector.extract_strided_slice %215 {offsets = [0, 248], sizes = [8, 8], strides = [1, 1]} : vector<8x256xf32> to vector<8x8xf32>
    %290 = vector.extract_strided_slice %215 {offsets = [0, 0], sizes = [8, 248], strides = [1, 1]} : vector<8x256xf32> to vector<8x248xf32>
    %291 = tpu.concatenate %289, %290 in 1 : vector<8x8xf32>, vector<8x248xf32> -> vector<8x256xf32>
    %cst_96 = arith.constant 0.000000e+00 : f32
    %292 = vector.broadcast %cst_96 : f32 to vector<8x256xf32>
    %293 = arith.select %12, %291, %292 : vector<8x256xi1>, vector<8x256xf32>
    %c80_97 = arith.constant 80 : index
    %c0_98 = arith.constant 0 : index
    %294 = vector.load %arg9[%c80_97, %c0_98] : memref<216x256xf32, #tpu.memory_space<vmem>>, vector<8x256xf32>
    tpu.vector_store %arg9[%c80_97, %c0_98], %293 {strides = array<i32>} : memref<216x256xf32, #tpu.memory_space<vmem>>, vector<8x256xf32>,
    %295 = vector.extract_strided_slice %215 {offsets = [0, 249], sizes = [8, 7], strides = [1, 1]} : vector<8x256xf32> to vector<8x7xf32>
    %296 = vector.extract_strided_slice %215 {offsets = [0, 0], sizes = [8, 249], strides = [1, 1]} : vector<8x256xf32> to vector<8x249xf32>
    %297 = tpu.concatenate %295, %296 in 1 : vector<8x7xf32>, vector<8x249xf32> -> vector<8x256xf32>
    %298 = arith.andi %12, %18 : vector<8x256xi1>
    %cst_99 = arith.constant 0.000000e+00 : f32
    %299 = vector.broadcast %cst_99 : f32 to vector<8x256xf32>
    %300 = arith.select %298, %297, %299 : vector<8x256xi1>, vector<8x256xf32>
    %c88_100 = arith.constant 88 : index
    %c0_101 = arith.constant 0 : index
    %301 = vector.load %arg9[%c88_100, %c0_101] : memref<216x256xf32, #tpu.memory_space<vmem>>, vector<8x256xf32>
    tpu.vector_store %arg9[%c88_100, %c0_101], %300 {strides = array<i32>} : memref<216x256xf32, #tpu.memory_space<vmem>>, vector<8x256xf32>,
    %302 = vector.extract_strided_slice %215 {offsets = [0, 255], sizes = [8, 1], strides = [1, 1]} : vector<8x256xf32> to vector<8x1xf32>
    %303 = vector.extract_strided_slice %215 {offsets = [0, 0], sizes = [8, 255], strides = [1, 1]} : vector<8x256xf32> to vector<8x255xf32>
    %304 = tpu.concatenate %302, %303 in 1 : vector<8x1xf32>, vector<8x255xf32> -> vector<8x256xf32>
    %cst_102 = arith.constant 0.000000e+00 : f32
    %305 = vector.broadcast %cst_102 : f32 to vector<8x256xf32>
    %306 = arith.select %16, %304, %305 : vector<8x256xi1>, vector<8x256xf32>
    %c96_103 = arith.constant 96 : index
    %c0_104 = arith.constant 0 : index
    %307 = vector.load %arg9[%c96_103, %c0_104] : memref<216x256xf32, #tpu.memory_space<vmem>>, vector<8x256xf32>
    tpu.vector_store %arg9[%c96_103, %c0_104], %306 {strides = array<i32>} : memref<216x256xf32, #tpu.memory_space<vmem>>, vector<8x256xf32>,
    %c104_105 = arith.constant 104 : index
    %c0_106 = arith.constant 0 : index
    %308 = vector.load %arg9[%c104_105, %c0_106] : memref<216x256xf32, #tpu.memory_space<vmem>>, vector<8x256xf32>
    tpu.vector_store %arg9[%c104_105, %c0_106], %215 {strides = array<i32>} : memref<216x256xf32, #tpu.memory_space<vmem>>, vector<8x256xf32>,
    %309 = vector.extract_strided_slice %215 {offsets = [0, 1], sizes = [8, 255], strides = [1, 1]} : vector<8x256xf32> to vector<8x255xf32>
    %310 = vector.extract_strided_slice %215 {offsets = [0, 0], sizes = [8, 1], strides = [1, 1]} : vector<8x256xf32> to vector<8x1xf32>
    %311 = tpu.concatenate %309, %310 in 1 : vector<8x255xf32>, vector<8x1xf32> -> vector<8x256xf32>
    %cst_107 = arith.constant 0.000000e+00 : f32
    %312 = vector.broadcast %cst_107 : f32 to vector<8x256xf32>
    %313 = arith.select %18, %311, %312 : vector<8x256xi1>, vector<8x256xf32>
    %c112_108 = arith.constant 112 : index
    %c0_109 = arith.constant 0 : index
    %314 = vector.load %arg9[%c112_108, %c0_109] : memref<216x256xf32, #tpu.memory_space<vmem>>, vector<8x256xf32>
    tpu.vector_store %arg9[%c112_108, %c0_109], %313 {strides = array<i32>} : memref<216x256xf32, #tpu.memory_space<vmem>>, vector<8x256xf32>,
    %315 = vector.extract_strided_slice %215 {offsets = [0, 7], sizes = [8, 249], strides = [1, 1]} : vector<8x256xf32> to vector<8x249xf32>
    %316 = vector.extract_strided_slice %215 {offsets = [0, 0], sizes = [8, 7], strides = [1, 1]} : vector<8x256xf32> to vector<8x7xf32>
    %317 = tpu.concatenate %315, %316 in 1 : vector<8x249xf32>, vector<8x7xf32> -> vector<8x256xf32>
    %318 = arith.andi %14, %16 : vector<8x256xi1>
    %cst_110 = arith.constant 0.000000e+00 : f32
    %319 = vector.broadcast %cst_110 : f32 to vector<8x256xf32>
    %320 = arith.select %318, %317, %319 : vector<8x256xi1>, vector<8x256xf32>
    %c120_111 = arith.constant 120 : index
    %c0_112 = arith.constant 0 : index
    %321 = vector.load %arg9[%c120_111, %c0_112] : memref<216x256xf32, #tpu.memory_space<vmem>>, vector<8x256xf32>
    tpu.vector_store %arg9[%c120_111, %c0_112], %320 {strides = array<i32>} : memref<216x256xf32, #tpu.memory_space<vmem>>, vector<8x256xf32>,
    %322 = vector.extract_strided_slice %215 {offsets = [0, 8], sizes = [8, 248], strides = [1, 1]} : vector<8x256xf32> to vector<8x248xf32>
    %323 = vector.extract_strided_slice %215 {offsets = [0, 0], sizes = [8, 8], strides = [1, 1]} : vector<8x256xf32> to vector<8x8xf32>
    %324 = tpu.concatenate %322, %323 in 1 : vector<8x248xf32>, vector<8x8xf32> -> vector<8x256xf32>
    %cst_113 = arith.constant 0.000000e+00 : f32
    %325 = vector.broadcast %cst_113 : f32 to vector<8x256xf32>
    %326 = arith.select %14, %324, %325 : vector<8x256xi1>, vector<8x256xf32>
    %c128_114 = arith.constant 128 : index
    %c0_115 = arith.constant 0 : index
    %327 = vector.load %arg9[%c128_114, %c0_115] : memref<216x256xf32, #tpu.memory_space<vmem>>, vector<8x256xf32>
    tpu.vector_store %arg9[%c128_114, %c0_115], %326 {strides = array<i32>} : memref<216x256xf32, #tpu.memory_space<vmem>>, vector<8x256xf32>,
    %328 = vector.extract_strided_slice %215 {offsets = [0, 9], sizes = [8, 247], strides = [1, 1]} : vector<8x256xf32> to vector<8x247xf32>
    %329 = vector.extract_strided_slice %215 {offsets = [0, 0], sizes = [8, 9], strides = [1, 1]} : vector<8x256xf32> to vector<8x9xf32>
    %330 = tpu.concatenate %328, %329 in 1 : vector<8x247xf32>, vector<8x9xf32> -> vector<8x256xf32>
    %331 = arith.andi %14, %18 : vector<8x256xi1>
    %cst_116 = arith.constant 0.000000e+00 : f32
    %332 = vector.broadcast %cst_116 : f32 to vector<8x256xf32>
    %333 = arith.select %331, %330, %332 : vector<8x256xi1>, vector<8x256xf32>
    %c136_117 = arith.constant 136 : index
    %c0_118 = arith.constant 0 : index
    %334 = vector.load %arg9[%c136_117, %c0_118] : memref<216x256xf32, #tpu.memory_space<vmem>>, vector<8x256xf32>
    tpu.vector_store %arg9[%c136_117, %c0_118], %333 {strides = array<i32>} : memref<216x256xf32, #tpu.memory_space<vmem>>, vector<8x256xf32>,
    %335 = vector.extract_strided_slice %215 {offsets = [0, 55], sizes = [8, 201], strides = [1, 1]} : vector<8x256xf32> to vector<8x201xf32>
    %336 = vector.extract_strided_slice %215 {offsets = [0, 0], sizes = [8, 55], strides = [1, 1]} : vector<8x256xf32> to vector<8x55xf32>
    %337 = tpu.concatenate %335, %336 in 1 : vector<8x201xf32>, vector<8x55xf32> -> vector<8x256xf32>
    %338 = arith.andi %10, %12 : vector<8x256xi1>
    %339 = arith.andi %338, %16 : vector<8x256xi1>
    %cst_119 = arith.constant 0.000000e+00 : f32
    %340 = vector.broadcast %cst_119 : f32 to vector<8x256xf32>
    %341 = arith.select %339, %337, %340 : vector<8x256xi1>, vector<8x256xf32>
    %c144_120 = arith.constant 144 : index
    %c0_121 = arith.constant 0 : index
    %342 = vector.load %arg9[%c144_120, %c0_121] : memref<216x256xf32, #tpu.memory_space<vmem>>, vector<8x256xf32>
    tpu.vector_store %arg9[%c144_120, %c0_121], %341 {strides = array<i32>} : memref<216x256xf32, #tpu.memory_space<vmem>>, vector<8x256xf32>,
    %343 = vector.extract_strided_slice %215 {offsets = [0, 56], sizes = [8, 200], strides = [1, 1]} : vector<8x256xf32> to vector<8x200xf32>
    %344 = vector.extract_strided_slice %215 {offsets = [0, 0], sizes = [8, 56], strides = [1, 1]} : vector<8x256xf32> to vector<8x56xf32>
    %345 = tpu.concatenate %343, %344 in 1 : vector<8x200xf32>, vector<8x56xf32> -> vector<8x256xf32>
    %346 = arith.andi %10, %12 : vector<8x256xi1>
    %cst_122 = arith.constant 0.000000e+00 : f32
    %347 = vector.broadcast %cst_122 : f32 to vector<8x256xf32>
    %348 = arith.select %346, %345, %347 : vector<8x256xi1>, vector<8x256xf32>
    %c152_123 = arith.constant 152 : index
    %c0_124 = arith.constant 0 : index
    %349 = vector.load %arg9[%c152_123, %c0_124] : memref<216x256xf32, #tpu.memory_space<vmem>>, vector<8x256xf32>
    tpu.vector_store %arg9[%c152_123, %c0_124], %348 {strides = array<i32>} : memref<216x256xf32, #tpu.memory_space<vmem>>, vector<8x256xf32>,
    %350 = vector.extract_strided_slice %215 {offsets = [0, 57], sizes = [8, 199], strides = [1, 1]} : vector<8x256xf32> to vector<8x199xf32>
    %351 = vector.extract_strided_slice %215 {offsets = [0, 0], sizes = [8, 57], strides = [1, 1]} : vector<8x256xf32> to vector<8x57xf32>
    %352 = tpu.concatenate %350, %351 in 1 : vector<8x199xf32>, vector<8x57xf32> -> vector<8x256xf32>
    %353 = arith.andi %10, %12 : vector<8x256xi1>
    %354 = arith.andi %353, %18 : vector<8x256xi1>
    %cst_125 = arith.constant 0.000000e+00 : f32
    %355 = vector.broadcast %cst_125 : f32 to vector<8x256xf32>
    %356 = arith.select %354, %352, %355 : vector<8x256xi1>, vector<8x256xf32>
    %c160_126 = arith.constant 160 : index
    %c0_127 = arith.constant 0 : index
    %357 = vector.load %arg9[%c160_126, %c0_127] : memref<216x256xf32, #tpu.memory_space<vmem>>, vector<8x256xf32>
    tpu.vector_store %arg9[%c160_126, %c0_127], %356 {strides = array<i32>} : memref<216x256xf32, #tpu.memory_space<vmem>>, vector<8x256xf32>,
    %358 = vector.extract_strided_slice %215 {offsets = [0, 63], sizes = [8, 193], strides = [1, 1]} : vector<8x256xf32> to vector<8x193xf32>
    %359 = vector.extract_strided_slice %215 {offsets = [0, 0], sizes = [8, 63], strides = [1, 1]} : vector<8x256xf32> to vector<8x63xf32>
    %360 = tpu.concatenate %358, %359 in 1 : vector<8x193xf32>, vector<8x63xf32> -> vector<8x256xf32>
    %361 = arith.andi %10, %16 : vector<8x256xi1>
    %cst_128 = arith.constant 0.000000e+00 : f32
    %362 = vector.broadcast %cst_128 : f32 to vector<8x256xf32>
    %363 = arith.select %361, %360, %362 : vector<8x256xi1>, vector<8x256xf32>
    %c168_129 = arith.constant 168 : index
    %c0_130 = arith.constant 0 : index
    %364 = vector.load %arg9[%c168_129, %c0_130] : memref<216x256xf32, #tpu.memory_space<vmem>>, vector<8x256xf32>
    tpu.vector_store %arg9[%c168_129, %c0_130], %363 {strides = array<i32>} : memref<216x256xf32, #tpu.memory_space<vmem>>, vector<8x256xf32>,
    %365 = vector.extract_strided_slice %215 {offsets = [0, 64], sizes = [8, 192], strides = [1, 1]} : vector<8x256xf32> to vector<8x192xf32>
    %366 = vector.extract_strided_slice %215 {offsets = [0, 0], sizes = [8, 64], strides = [1, 1]} : vector<8x256xf32> to vector<8x64xf32>
    %367 = tpu.concatenate %365, %366 in 1 : vector<8x192xf32>, vector<8x64xf32> -> vector<8x256xf32>
    %cst_131 = arith.constant 0.000000e+00 : f32
    %368 = vector.broadcast %cst_131 : f32 to vector<8x256xf32>
    %369 = arith.select %10, %367, %368 : vector<8x256xi1>, vector<8x256xf32>
    %c176_132 = arith.constant 176 : index
    %c0_133 = arith.constant 0 : index
    %370 = vector.load %arg9[%c176_132, %c0_133] : memref<216x256xf32, #tpu.memory_space<vmem>>, vector<8x256xf32>
    tpu.vector_store %arg9[%c176_132, %c0_133], %369 {strides = array<i32>} : memref<216x256xf32, #tpu.memory_space<vmem>>, vector<8x256xf32>,
    %371 = vector.extract_strided_slice %215 {offsets = [0, 65], sizes = [8, 191], strides = [1, 1]} : vector<8x256xf32> to vector<8x191xf32>
    %372 = vector.extract_strided_slice %215 {offsets = [0, 0], sizes = [8, 65], strides = [1, 1]} : vector<8x256xf32> to vector<8x65xf32>
    %373 = tpu.concatenate %371, %372 in 1 : vector<8x191xf32>, vector<8x65xf32> -> vector<8x256xf32>
    %374 = arith.andi %10, %18 : vector<8x256xi1>
    %cst_134 = arith.constant 0.000000e+00 : f32
    %375 = vector.broadcast %cst_134 : f32 to vector<8x256xf32>
    %376 = arith.select %374, %373, %375 : vector<8x256xi1>, vector<8x256xf32>
    %c184_135 = arith.constant 184 : index
    %c0_136 = arith.constant 0 : index
    %377 = vector.load %arg9[%c184_135, %c0_136] : memref<216x256xf32, #tpu.memory_space<vmem>>, vector<8x256xf32>
    tpu.vector_store %arg9[%c184_135, %c0_136], %376 {strides = array<i32>} : memref<216x256xf32, #tpu.memory_space<vmem>>, vector<8x256xf32>,
    %378 = vector.extract_strided_slice %215 {offsets = [0, 71], sizes = [8, 185], strides = [1, 1]} : vector<8x256xf32> to vector<8x185xf32>
    %379 = vector.extract_strided_slice %215 {offsets = [0, 0], sizes = [8, 71], strides = [1, 1]} : vector<8x256xf32> to vector<8x71xf32>
    %380 = tpu.concatenate %378, %379 in 1 : vector<8x185xf32>, vector<8x71xf32> -> vector<8x256xf32>
    %381 = arith.andi %10, %14 : vector<8x256xi1>
    %382 = arith.andi %381, %16 : vector<8x256xi1>
    %cst_137 = arith.constant 0.000000e+00 : f32
    %383 = vector.broadcast %cst_137 : f32 to vector<8x256xf32>
    %384 = arith.select %382, %380, %383 : vector<8x256xi1>, vector<8x256xf32>
    %c192_138 = arith.constant 192 : index
    %c0_139 = arith.constant 0 : index
    %385 = vector.load %arg9[%c192_138, %c0_139] : memref<216x256xf32, #tpu.memory_space<vmem>>, vector<8x256xf32>
    tpu.vector_store %arg9[%c192_138, %c0_139], %384 {strides = array<i32>} : memref<216x256xf32, #tpu.memory_space<vmem>>, vector<8x256xf32>,
    %386 = vector.extract_strided_slice %215 {offsets = [0, 72], sizes = [8, 184], strides = [1, 1]} : vector<8x256xf32> to vector<8x184xf32>
    %387 = vector.extract_strided_slice %215 {offsets = [0, 0], sizes = [8, 72], strides = [1, 1]} : vector<8x256xf32> to vector<8x72xf32>
    %388 = tpu.concatenate %386, %387 in 1 : vector<8x184xf32>, vector<8x72xf32> -> vector<8x256xf32>
    %389 = arith.andi %10, %14 : vector<8x256xi1>
    %cst_140 = arith.constant 0.000000e+00 : f32
    %390 = vector.broadcast %cst_140 : f32 to vector<8x256xf32>
    %391 = arith.select %389, %388, %390 : vector<8x256xi1>, vector<8x256xf32>
    %c200_141 = arith.constant 200 : index
    %c0_142 = arith.constant 0 : index
    %392 = vector.load %arg9[%c200_141, %c0_142] : memref<216x256xf32, #tpu.memory_space<vmem>>, vector<8x256xf32>
    tpu.vector_store %arg9[%c200_141, %c0_142], %391 {strides = array<i32>} : memref<216x256xf32, #tpu.memory_space<vmem>>, vector<8x256xf32>,
    %393 = vector.extract_strided_slice %215 {offsets = [0, 73], sizes = [8, 183], strides = [1, 1]} : vector<8x256xf32> to vector<8x183xf32>
    %394 = vector.extract_strided_slice %215 {offsets = [0, 0], sizes = [8, 73], strides = [1, 1]} : vector<8x256xf32> to vector<8x73xf32>
    %395 = tpu.concatenate %393, %394 in 1 : vector<8x183xf32>, vector<8x73xf32> -> vector<8x256xf32>
    %396 = arith.andi %10, %14 : vector<8x256xi1>
    %397 = arith.andi %396, %18 : vector<8x256xi1>
    %cst_143 = arith.constant 0.000000e+00 : f32
    %398 = vector.broadcast %cst_143 : f32 to vector<8x256xf32>
    %399 = arith.select %397, %395, %398 : vector<8x256xi1>, vector<8x256xf32>
    %c208_144 = arith.constant 208 : index
    %c0_145 = arith.constant 0 : index
    %400 = vector.load %arg9[%c208_144, %c0_145] : memref<216x256xf32, #tpu.memory_space<vmem>>, vector<8x256xf32>
    tpu.vector_store %arg9[%c208_144, %c0_145], %399 {strides = array<i32>} : memref<216x256xf32, #tpu.memory_space<vmem>>, vector<8x256xf32>,
    %c0_146 = arith.constant 0 : index
    %c0_147 = arith.constant 0 : index
    %401 = vector.load %arg3[%c0_146, %c0_147] : memref<8x216xbf16, #tpu.memory_space<vmem>>, vector<8x216xbf16>
    %c0_148 = arith.constant 0 : index
    %c0_149 = arith.constant 0 : index
    %402 = vector.load %arg9[%c0_148, %c0_149] : memref<216x256xf32, #tpu.memory_space<vmem>>, vector<216x256xf32>
    %403 = arith.truncf %402 : vector<216x256xf32> to vector<216x256xbf16>
    %cst_150 = arith.constant dense<0.000000e+00> : vector<8x256xf32>
    %404 = tpu.matmul %401, %403, %cst_150 {dimension_numbers = #tpu.dot_dimension_numbers<[1], [0], [0], [1], [0, 0, 1, 1], [], []>} : vector<8x216xbf16>, vector<216x256xbf16>, vector<8x256xf32> -> vector<8x256xf32>
    %c0_151 = arith.constant 0 : index
    %c0_152 = arith.constant 0 : index
    %405 = vector.load %arg6[%c0_151, %c0_152] : memref<8x1xf32, #tpu.memory_space<vmem>>, vector<8x1xf32>
    %406 = vector.broadcast %405 : vector<8x1xf32> to vector<8x256xf32>
    %407 = arith.mulf %404, %406 : vector<8x256xf32>
    %c0_153 = arith.constant 0 : index
    %c0_154 = arith.constant 0 : index
    %408 = vector.load %arg7[%c0_153, %c0_154] : memref<8x1xf32, #tpu.memory_space<vmem>>, vector<8x1xf32>
    %409 = vector.broadcast %408 : vector<8x1xf32> to vector<8x256xf32>
    %410 = arith.addf %407, %409 : vector<8x256xf32>
    %411 = arith.addf %410, %1 : vector<8x256xf32>
    %cst_155 = arith.constant 0.000000e+00 : f32
    %412 = vector.broadcast %cst_155 : f32 to vector<8x256xf32>
    %413 = arith.maximumf %411, %412 : vector<8x256xf32>
    %c0_156 = arith.constant 0 : index
    %c0_157 = arith.constant 0 : index
    %c0_158 = arith.constant 0 : index
    %414 = vector.load %arg8[%c0_156, %c0_157, %c0_158] : memref<1x8x256xf32, #tpu.memory_space<vmem>>, vector<1x8x256xf32>
    %415 = vector.shape_cast %414 : vector<1x8x256xf32> to vector<8x256xf32>
    %416 = vector.shape_cast %413 : vector<8x256xf32> to vector<1x8x256xf32>
    tpu.vector_store %arg8[%c0_156, %c0_157, %c0_158], %416 {strides = array<i32>} : memref<1x8x256xf32, #tpu.memory_space<vmem>>, vector<1x8x256xf32>,
    return
  }
  func.func @transform_0(%arg0: i32) -> (i32, i32, i32) {
    %c0_i32 = arith.constant 0 : i32
    %c0_i32_0 = arith.constant 0 : i32
    %c0_i32_1 = arith.constant 0 : i32
    return %arg0, %c0_i32, %c0_i32_0 : i32, i32, i32
  }
  func.func @transform_1(%arg0: i32) -> (i32, i32) {
    %c0_i32 = arith.constant 0 : i32
    %c0_i32_0 = arith.constant 0 : i32
    %c0_i32_1 = arith.constant 0 : i32
    return %c0_i32, %c0_i32_0 : i32, i32
  }
  func.func @transform_2(%arg0: i32) -> (i32, i32) {
    %c0_i32 = arith.constant 0 : i32
    %c0_i32_0 = arith.constant 0 : i32
    %c0_i32_1 = arith.constant 0 : i32
    return %c0_i32, %c0_i32_0 : i32, i32
  }
  func.func @transform_3(%arg0: i32) -> (i32, i32) {
    %c0_i32 = arith.constant 0 : i32
    %c0_i32_0 = arith.constant 0 : i32
    %c0_i32_1 = arith.constant 0 : i32
    return %c0_i32, %c0_i32_0 : i32, i32
  }
  func.func @transform_4(%arg0: i32) -> (i32, i32) {
    %c0_i32 = arith.constant 0 : i32
    %c0_i32_0 = arith.constant 0 : i32
    %c0_i32_1 = arith.constant 0 : i32
    return %c0_i32, %c0_i32_0 : i32, i32
  }
  func.func @transform_5(%arg0: i32) -> (i32, i32) {
    %c0_i32 = arith.constant 0 : i32
    %c0_i32_0 = arith.constant 0 : i32
    %c0_i32_1 = arith.constant 0 : i32
    return %c0_i32, %c0_i32_0 : i32, i32
  }
  func.func @transform_6(%arg0: i32) -> (i32, i32) {
    %c0_i32 = arith.constant 0 : i32
    %c0_i32_0 = arith.constant 0 : i32
    %c0_i32_1 = arith.constant 0 : i32
    return %c0_i32, %c0_i32_0 : i32, i32
  }
  func.func @transform_7(%arg0: i32) -> (i32, i32, i32) {
    %c0_i32 = arith.constant 0 : i32
    %c0_i32_0 = arith.constant 0 : i32
    %c0_i32_1 = arith.constant 0 : i32
    return %arg0, %c0_i32, %c0_i32_0 : i32, i32, i32
  }
}

</mosaic_0001>

<bundles_post_ra>
// kernel: basic_block_forward.1
= control target key start
LH: loop header
LB: loop body
LE: loop exit
PB: predicated region body
PF: predicated region fallthrough
CT: control target
= control target key end

     0   :  { %s1702_s24 = smov 0   ;;  %s2490_s0 = inlined_call_operand.vmem [shape: f32[2,8,256], index: 0, kind: input, shape index: {}]   ;;  %s2491_s1 = inlined_call_operand.vmem [shape: bf16[8,216], index: 1, kind: input, shape index: {}]   ;;  %s2492_s2 = inlined_call_operand.vmem [shape: bf16[8,216], index: 2, kind: input, shape index: {}]   ;;  %s2493_s3 = inlined_call_operand.vmem [shape: f32[8,1], index: 3, kind: input, shape index: {}]   ;;  %s2494_s4 = inlined_call_operand.vmem [shape: f32[8,1], index: 4, kind: input, shape index: {}]   ;;  %s2495_s5 = inlined_call_operand.vmem [shape: f32[8,1], index: 5, kind: input, shape index: {}]   ;;  %s2496_s6 = inlined_call_operand.vmem [shape: f32[8,1], index: 6, kind: input, shape index: {}]   ;;  %s2497_s7 = inlined_call_operand.vmem [shape: f32[2,8,256], index: 7, kind: output, shape index: {}]  }
   0x1 LB: > { %s1255_s25 = sadd.s32 4294967295, %s1641_s24   ;;  %p1259_p0 = scmp.ge.s32.totalorder %s1641_s24, 1  ;;  %s1641_s24 = sphi %s1702_s24, %s17_s24  }
   0x2   : > { %p237_p1 = scmp.lt.s32.totalorder %s1641_s24, 3 }
   0x4   : > { %p238_p2 = pnand %p1259_p0, %p237_p1 }
   0x5   : > { %p269_p3 = scmp.lt.s32.totalorder (!%p238_p2), %s1255_s25, 1  ;;  %s1643_s30 = smov (!%p238_p2), 71   ;;  %v1746_v4 = vld [vmem:[%s2491_s1] sm:$0xff] (!%p238_p2)  ;;  %vm2501_vm0 = vcmask (!%p238_p2), 719872   ;;  %v1660_v8 = vmov (!%p238_p2), 0   ;;  %v282_v9 = vlaneseq (!%p238_p2)  ;;  %v2550_v15 = vmov (!%p238_p2), 0 }
   0x6   : > { %241 = sbr.rel (%p238_p2) target bundleno = 831 (0x33f), region = 48  ;;  %s1644_s8 = smov (!%p238_p2), 73   ;;  %v1265_v5 = vcombine.high (!%p238_p2), %v1746_v4, %v1746_v4  ;;  %v760_v6 = vld [vmem:[%s2493_s3] sm:$0xff] (!%p238_p2)  ;;  %1544 = vset.pattern.permute.xlu1 (!%p238_p2), %v1660_v8  ;;  %1545 = vset.pattern.permute.xlu0 (!%p238_p2), %v1660_v8  ;;  %v2554_v18 = vmov (!%p238_p2), 0  ;;  %v2558_v22 = vmov (!%p238_p2), 0  ;;  %vm2504_vm9 = vcmask (!%p238_p2), 580608  }
   0x7   : > { %s1645_s9 = smov (!%p238_p2), 65   ;;  %s1646_s10 = smov (!%p238_p2), 72   ;;  %v768_v7 = vld [vmem:[%s2494_s4] sm:$0xff] (!%p238_p2)  ;;  %v1757_v10 = vand.u32 (!%p238_p2), 127, %v282_v9  ;;  %vm2508_vm11 = vcmask (!%p238_p2), 596992   ;;  %v2562_v28 = vmov (!%p238_p2), 0 }
   0x8   : > { %s1647_s11 = smov (!%p238_p2), 63   ;;  %s1648_s12 = smov (!%p238_p2), 64   ;;  %1267 = vmatprep.mubr.msk.bf16.mxu0 (!%p238_p2), %vm2501_vm0, %v1265_v5  ;;  %v2566_v32 = vmov (!%p238_p2), 0  ;;  %vm2507_vm15 = vcmask (!%p238_p2), 588800   ;;  %vm2574_vm0 = vcmask (!%p238_p2), 580608   ;;  %v2577_v48 = vmov (!%p238_p2), 0 }
   0x9   : > { %s1649_s13 = smov (!%p238_p2), 56   ;;  %s1650_s14 = smov (!%p238_p2), 57   ;;  %v1760_v11 = vadd.s32 (!%p238_p2), 128, %v1757_v10  ;;  %v285_v14 = vand.u32 (!%p238_p2), 63, %v1757_v10  ;;  %v287_v17 = vand.u32 (!%p238_p2), 7, %v1757_v10  ;;  %vm2503_vm3 = vcmp.ge.s32.totalorder (!%p238_p2), %v1757_v10, 64 }
   0xa   : > { %s1651_s15 = smov (!%p238_p2), 9   ;;  %s1652_s16 = smov (!%p238_p2), 55   ;;  %vm2571_vm10 = vcmp.ge.s32.totalorder (!%p238_p2), %v1757_v10, 64  ;;  %v2580_v56 = vmov (!%p238_p2), 0  ;;  %v2583_v58 = vmov (!%p238_p2), 0  ;;  %v2587_v61 = vmov (!%p238_p2), 0 }
   0xb   : > { %s1653_s17 = smov (!%p238_p2), 7   ;;  %s1654_s18 = smov (!%p238_p2), 8   ;;  %v286_v12 = vand.u32 (!%p238_p2), 63, %v1760_v11  ;;  %v288_v13 = vand.u32 (!%p238_p2), 7, %v1760_v11  ;;  %vm1775_vm4 = vcmp.ge.s32.totalorder (!%p238_p2), %v285_v14, 8  ;;  %vm1787_vm7 = vcmp.ge.s32.totalorder (!%p238_p2), %v287_v17, 1 }
   0xc   : > { %s1655_s19 = smov (!%p238_p2), 1   ;;  %s2499_s20 = smov (!%p238_p2), 127   ;;  %v2555_v18 = vsel (!%p238_p2), %vm1775_vm4, 4294967295, %v2554_v18  ;;  %v2559_v22 = vsel (!%p238_p2), %vm1787_vm7, 4294967295, %v2558_v22  ;;  %vm1795_vm8 = vmand (!%p238_p2), %vm2503_vm3, %vm1775_vm4  ;;  %vm1810_vm13 = vcmp.lt.s32.totalorder (!%p238_p2), %v287_v17, 7  ;;  %vm2570_vm3 = vcmask (!%p238_p2), 531456  }
   0xd   : > { %s2737_s25 = smov (!%p269_p3, %s1255_s25), 1  ;;  %s1657_s21 = smov 121   ;;  %vm1765_vm1 = vcmp.ge.s32.totalorder %v286_v12, 8  ;;  %vm1769_vm2 = vcmp.ge.s32.totalorder %v288_v13, 1  ;;  %vm1783_vm6 = vcmp.lt.s32.totalorder %v288_v13, 7  ;;  %vm1814_vm14 = vcmp.lt.s32.totalorder %v286_v12, 56  ;;  %vm2575_vm4 = vmmov %vm2570_vm3 }
   0xe   : > { %s2498_s26 = sshll.u32 %s2737_s25, 4  ;;  %s2500_s22 = smov 120   ;;  %v2551_v15 = vsel %vm1765_vm1, 4294967295, %v2550_v15  ;;  %vm2502_vm5 = vmand %vm1765_vm1, %vm1769_vm2  ;;  %v2567_v32 = vsel %vm1814_vm14, 4294967295, %v2566_v32 }
   0xf   : > { %s273_s29 = scalar_lea.vmem %s2490_s0, %s2498_s26  ;;  %s1659_s23 = smov 119   ;;  %vm1806_vm12 = vmpackc.low %vm1765_vm1, %vm2502_vm5  ;;  %vm1832_vm5 = vcmp.lt.s32.totalorder %v285_v14, 56 }
  0x10   : > { %v1718_v0 = vld [vmem:[%s273_s29] sm:$0xff]  ;;  %v1720_v1 = vld [vmem:[%s273_s29 + $0x8] sm:$0xff]  ;;  %v2563_v28 = vsel %vm1806_vm12, 4294967295, %v2562_v28  ;;  %s2673_s26 = smov 127  }
  0x11   : > { %v1469_v2 = vpack.i.bf16 %v1718_v0, %v1720_v1  ;;  %v1524_v3 = vpack.i.bf16 %v1720_v1, %v1718_v0 }
  0x13   : > { %1470 = vrot.lane.b32.xlu1 %v1469_v2, %s1643_s30  ;;  %1460 = vrot.lane.b32.xlu0 %v1469_v2, %s1644_s8 }
  0x17   : > { %1475 = vrot.lane.b32.xlu1 %v1469_v2, %s1645_s9  ;;  %1465 = vrot.lane.b32.xlu0 %v1469_v2, %s1646_s10 }
  0x1b   : > { %1485 = vrot.lane.b32.xlu1 %v1469_v2, %s1647_s11  ;;  %1480 = vrot.lane.b32.xlu0 %v1469_v2, %s1648_s12 }
  0x1f   : > { %1495 = vrot.lane.b32.xlu1 %v1469_v2, %s1649_s13  ;;  %1490 = vrot.lane.b32.xlu0 %v1469_v2, %s1650_s14 }
  0x23   : > { %1505 = vrot.lane.b32.xlu1 %v1469_v2, %s1651_s15  ;;  %1500 = vrot.lane.b32.xlu0 %v1469_v2, %s1652_s16 }
  0x27   : > { %1515 = vrot.lane.b32.xlu1 %v1469_v2, %s1653_s17  ;;  %1510 = vrot.lane.b32.xlu0 %v1469_v2, %s1654_s18 }
  0x2b   : > { %1520 = vrot.lane.b32.xlu0 %v1469_v2, %s1655_s19  ;;  %1525 = vrot.lane.b32.xlu1 %v1524_v3, %s2499_s20 }
  0x2f   : > { %1530 = vrot.lane.b32.xlu0 %v1524_v3, %s1657_s21  ;;  %1535 = vrot.lane.b32.xlu1 %v1524_v3, %s2500_s22 }
  0x33   : > { %1540 = vrot.lane.b32.xlu0 %v1524_v3, %s1659_s23  ;;  %763 = vperm.xlu1 %1544, %v760_v6  }
  0x37   : > { %771 = vperm.xlu0 %1545, %v768_v7  }
  0x85   : > { %v1471_v19 = vpop.permute.xlu1 %1470  ;;  %v1461_v20 = vpop.permute.xlu0 %1460 }
  0x86   : > { %v1473_v24 = vunpack.i.h.bf16 %v1471_v19  ;;  %v1472_v25 = vunpack.i.l.bf16 %v1471_v19  ;;  %v1463_v26 = vunpack.i.h.bf16 %v1461_v20  ;;  %v1462_v27 = vunpack.i.l.bf16 %v1461_v20 }
  0x88   : > { %v341_v37 = vsel %vm2504_vm9, %v1473_v24, %v1472_v25  ;;  %v309_v38 = vsel %vm2508_vm11, %v1463_v26, %v1462_v27  ;;  %v312_v42 = vsel %vm2508_vm11, %v1462_v27, %v1463_v26  ;;  %vm1844_vm9 = vmand %vm2571_vm10, %vm1787_vm7  ;;  %v344_v45 = vsel %vm2574_vm0, %v1472_v25, %v1473_v24 }
  0x89   : > { %v1476_v30 = vpop.permute.xlu1 %1475  ;;  %v1466_v31 = vpop.permute.xlu0 %1465  ;;  %vm2579_vm0 = vmand %vm1765_vm1, %vm1783_vm6  ;;  %vm2585_vm11 = vcmask 515072   ;;  %vm2586_vm10 = vcmask 523264   ;;  %vm2519_vm1 = vcmask 465920   ;;  %v2597_v25 = vmov 0 }
  0x8a   : > { %v1478_v33 = vunpack.i.h.bf16 %v1476_v30  ;;  %v1477_v34 = vunpack.i.l.bf16 %v1476_v30  ;;  %v1468_v35 = vunpack.i.h.bf16 %v1466_v31  ;;  %v1467_v36 = vunpack.i.l.bf16 %v1466_v31 }
  0x8c   : > { %v357_v40 = vsel %vm2570_vm3, %v1478_v33, %v1477_v34  ;;  %v327_v41 = vsel %vm2507_vm15, %v1468_v35, %v1467_v36  ;;  %v330_v43 = vsel %vm2507_vm15, %v1467_v36, %v1468_v35  ;;  %v360_v46 = vsel %vm2575_vm4, %v1477_v34, %v1478_v33  ;;  %vm2576_vm3 = vmand %vm1795_vm8, %vm1787_vm7 }
  0x8d   : > { %v1850_v47 = vpack.c.bf16 %v327_v41, %v309_v38  ;;  %vm1859_vm15 = vmpackc.low %vm1795_vm8, %vm2576_vm3  ;;  %v1863_v49 = vpack.c.bf16 %v330_v43, %v312_v42  ;;  %v1486_v50 = vpop.permute.xlu1 %1485  ;;  %v1481_v51 = vpop.permute.xlu0 %1480  ;;  %v1876_v57 = vpack.c.bf16 %v357_v40, %v341_v37  ;;  %vm2514_vm7 = vmmov 1  }
  0x8e   : > { %v2578_v48 = vsel %vm1859_vm15, 4294967295, %v2577_v48  ;;  %v1488_v52 = vunpack.i.h.bf16 %v1486_v50  ;;  %v1487_v53 = vunpack.i.l.bf16 %v1486_v50  ;;  %v1483_v54 = vunpack.i.h.bf16 %v1481_v51  ;;  %vm1872_vm4 = vmpackc.low %vm1769_vm2, %vm2579_vm0 }
  0x8f   : > { %v1482_v55 = vunpack.i.l.bf16 %v1481_v51  ;;  %v2581_v56 = vsel %vm1872_vm4, 4294967295, %v2580_v56  ;;  %1278 = vmatprep.subr.msk.bf16.mxu0 %vm1806_vm12, %v1850_v47  ;;  %vm2582_vm3 = vmand %vm1795_vm8, %vm1810_vm13  ;;  %vm2518_vm12 = vcmask 457728   ;;  %v1908_v62 = vpack.c.bf16 %v360_v46, %v344_v45 }
  0x90   : > { %vm1892_vm0 = vmpackc.low %vm1844_vm9, %vm2582_vm3  ;;  %1281 = vmatpush1.bf16.msk.msra.mxu0 %vm1859_vm15, %v1863_v49  ;;  %v387_v59 = vsel %vm2585_vm11, %v1488_v52, %v1487_v53  ;;  %v2602_v35 = vmov 0  ;;  %v2610_v45 = vmov 0 }
  0x91   : > { %v2584_v58 = vsel %vm1892_vm0, 4294967295, %v2583_v58  ;;  %v373_v60 = vsel %vm2586_vm10, %v1483_v54, %v1482_v55  ;;  %vm1904_vm8 = vmpackc.low %vm1783_vm6, %vm2514_vm7  ;;  %1284 = vmatprep.subr.msk.bf16.mxu0 %vm1872_vm4, %v1876_v57  ;;  %v1496_v5 = vpop.permute.xlu1 %1495  ;;  %v1491_v6 = vpop.permute.xlu0 %1490  ;;  %vm2595_vm4 = vnez %v2559_v22  ;;  %v1264_v22 = vcombine.low %v1746_v4, %v1746_v4 }
  0x92   : > { %v2588_v61 = vsel %vm1904_vm8, 4294967295, %v2587_v61  ;;  %vm2589_vm9 = vmmov %vm2585_vm11  ;;  %v1912_v3 = vpack.c.bf16 %v387_v59, %v373_v60  ;;  %vm2591_vm11 = vcmp.ge.s32.totalorder %v1757_v10, 64  ;;  %v1498_v8 = vunpack.i.h.bf16 %v1496_v5 }
  0x93   : > { %v390_v63 = vsel %vm2589_vm9, %v1487_v53, %v1488_v52  ;;  %vm2590_vm3 = vmmov %vm2586_vm10  ;;  %v1497_v9 = vunpack.i.l.bf16 %v1496_v5  ;;  %v1493_v12 = vunpack.i.h.bf16 %v1491_v6  ;;  %v1492_v13 = vunpack.i.l.bf16 %v1491_v6 }
  0x94   : > { %v376_v2 = vsel %vm2590_vm3, %v1482_v55, %v1483_v54  ;;  %vm1921_vm10 = vmand %vm2591_vm11, %vm1832_vm5  ;;  %1287 = vmatpush1.bf16.msk.msra.mxu0 %vm1892_vm0, %v1908_v62  ;;  %v2600_v10 = vmov 0  ;;  %v2615_v59 = vmov 0  ;;  %v2619_v6 = vmov 0 }
  0x95   : > { %vm2594_vm9 = vmmov %vm2591_vm11  ;;  %v1933_v14 = vpack.c.bf16 %v390_v63, %v376_v2  ;;  %v421_v17 = vsel %vm2518_vm12, %v1498_v8, %v1497_v9  ;;  %v403_v19 = vsel %vm2519_vm1, %v1493_v12, %v1492_v13  ;;  %v424_v20 = vsel %vm2518_vm12, %v1497_v9, %v1498_v8  ;;  %1290 = vmatprep.subr.msk.bf16.mxu0 %vm1904_vm8, %v1912_v3  ;;  %v1506_v26 = vpop.permute.xlu1 %1505  ;;  %v1501_v27 = vpop.permute.xlu0 %1500 }
  0x96   : > { %vm391_vm3 = vmand %vm2594_vm9, %vm1810_vm13  ;;  %v406_v23 = vsel %vm2519_vm1, %v1492_v13, %v1493_v12  ;;  %v1946_v24 = vpack.c.bf16 %v421_v17, %v403_v19  ;;  %v1508_v30 = vunpack.i.h.bf16 %v1506_v26  ;;  %v1507_v31 = vunpack.i.l.bf16 %v1506_v26 }
  0x97   : > { %vm409_vm9 = vmand %vm1921_vm10, %vm2595_vm4  ;;  %v1503_v33 = vunpack.i.h.bf16 %v1501_v27  ;;  %v1502_v34 = vunpack.i.l.bf16 %v1501_v27  ;;  %v1974_v36 = vpack.c.bf16 %v424_v20, %v406_v23  ;;  %v2621_v26 = vmov 0 }
  0x98   : > { %vm2596_vm7 = vmmov %vm2591_vm11  ;;  %vm2522_vm11 = vcmask 449536  }
  0x99   : > { %vm1953_vm0 = vmpackc.low %vm391_vm3, %vm2596_vm7  ;;  %vm2604_vm3 = vcmask 72704   ;;  %v1981_v38 = vsel %vm2522_vm11, %v1503_v33, %v1502_v34  ;;  %v1989_v41 = vsel %vm2522_vm11, %v1502_v34, %v1503_v33  ;;  %v1516_v43 = vpop.permute.xlu1 %1515  ;;  %v1511_v44 = vpop.permute.xlu0 %1510  ;;  %vm2608_vm11 = vnez %v2551_v15 }
  0x9a   : > { %v2598_v25 = vsel %vm1953_vm0, 4294967295, %v2597_v25  ;;  %vm2599_vm12 = vmand %vm1814_vm14, %vm1769_vm2  ;;  %1293 = vmatpush1.bf16.msk.msra.mxu0 %vm1953_vm0, %v1933_v14  ;;  %v451_v37 = vsel %vm2604_vm3, %v1508_v30, %v1507_v31  ;;  %v1518_v46 = vunpack.i.h.bf16 %v1516_v43  ;;  %v1517_v50 = vunpack.i.l.bf16 %v1516_v43 }
  0x9b   : > { %vm1964_vm1 = vmpackc.low %vm1814_vm14, %vm2599_vm12  ;;  %v1301_v42 = vpack.c.bf16 %v451_v37, %v1981_v38  ;;  %vm2606_vm12 = vnez %v2555_v18  ;;  %v1513_v51 = vunpack.i.h.bf16 %v1511_v44  ;;  %v1512_v52 = vunpack.i.l.bf16 %v1511_v44 }
  0x9c   : > { %v2601_v10 = vsel %vm1964_vm1, 4294967295, %v2600_v10  ;;  %vm1970_vm7 = vmpackc.low %vm1921_vm10, %vm409_vm9  ;;  %1296 = vmatprep.subr.msk.bf16.mxu0 %vm1964_vm1, %v1946_v24  ;;  %vm2612_vm0 = vcmask 56320   ;;  %v2624_v37 = vmov 0  ;;  %v2626_v43 = vmov 0 }
  0x9d   : > { %v2603_v35 = vsel %vm1970_vm7, 4294967295, %v2602_v35  ;;  %vm2605_vm8 = vmmov %vm2604_vm3  ;;  %vm2529_vm3 = vcmask 64512   ;;  %v481_v54 = vsel %vm2612_vm0, %v1518_v46, %v1517_v50  ;;  %v1521_v5 = vpop.permute.xlu0 %1520  ;;  %v1526_v7 = vpop.permute.xlu1 %1525 }
  0x9e   : > { %v454_v40 = vsel %vm2605_vm8, %v1507_v31, %v1508_v30  ;;  %vm2607_vm8 = vmand %vm1814_vm14, %vm1783_vm6  ;;  %1299 = vmatpush1.bf16.msk.msra.mxu0 %vm1970_vm7, %v1974_v36  ;;  %v467_v55 = vsel %vm2529_vm3, %v1513_v51, %v1512_v52  ;;  %vm2528_vm14 = vcmask 7168   ;;  %v470_v63 = vsel %vm2529_vm3, %v1512_v52, %v1513_v51 }
  0x9f   : > { %vm2609_vm9 = vmand %vm2608_vm11, %vm1769_vm2  ;;  %v1304_v53 = vpack.c.bf16 %v454_v40, %v1989_v41  ;;  %v1307_v2 = vpack.c.bf16 %v481_v54, %v467_v55  ;;  %v1523_v8 = vunpack.i.h.bf16 %v1521_v5  ;;  %v1522_v9 = vunpack.i.l.bf16 %v1521_v5 }
  0xa0   : > { %vm2009_vm15 = vmpackc.low %vm2609_vm9, %vm2607_vm8  ;;  %v1528_v12 = vunpack.i.h.bf16 %v1526_v7  ;;  %v1527_v13 = vunpack.i.l.bf16 %v1526_v7  ;;  %v2631_v54 = vmov 0  ;;  %v2637_v5 = vmov 0 }
  0xa1   : > { %v2611_v45 = vsel %vm2009_vm15, 4294967295, %v2610_v45  ;;  %vm2613_vm9 = vmand %vm1921_vm10, %vm1810_vm13  ;;  %1302 = vmatprep.subr.msk.bf16.mxu0 %vm2009_vm15, %v1301_v42  ;;  %v497_v19 = vsel %vm2528_vm14, %v1523_v8, %v1522_v9  ;;  %v500_v20 = vsel %vm2528_vm14, %v1522_v9, %v1523_v8  ;;  %v1531_v30 = vpop.permute.xlu0 %1530  ;;  %v1536_v31 = vpop.permute.xlu1 %1535  ;;  %vm2623_vm14 = vmmov 1  }
  0xa2   : > { %vm2614_vm8 = vmand %vm2606_vm12, %vm2595_vm4  ;;  %v1313_v23 = vpack.c.bf16 %v1720_v1, %v497_v19  ;;  %v1533_v33 = vunpack.i.h.bf16 %v1531_v30  ;;  %v1532_v34 = vunpack.i.l.bf16 %v1531_v30  ;;  %v1538_v40 = vunpack.i.h.bf16 %v1536_v31 }
  0xa3   : > { %vm2029_vm1 = vmpackc.low %vm2614_vm8, %vm2613_vm9  ;;  %vm2531_vm9 = vcmask 1039360   ;;  %v1537_v42 = vunpack.i.l.bf16 %v1536_v31  ;;  %v1316_v44 = vpack.c.bf16 %v1718_v0, %v500_v20  ;;  %vm2628_vm15 = vcmask 1039360  }
  0xa4   : > { %v2616_v59 = vsel %vm2029_vm1, 4294967295, %v2615_v59  ;;  %vm2617_vm7 = vmmov %vm2612_vm0  ;;  %1305 = vmatpush1.bf16.msk.msra.mxu0 %vm2029_vm1, %v1304_v53  ;;  %v516_v27 = vsel %vm2531_vm9, %v1528_v12, %v1527_v13  ;;  %vm2538_vm1 = vcmp.lt.s32.totalorder %v1760_v11, 192  ;;  %v2641_v8 = vmov 0 }
  0xa5   : > { %v484_v60 = vsel %vm2617_vm7, %v1517_v50, %v1518_v46  ;;  %vm2618_vm0 = vmand %vm2608_vm11, %vm1783_vm6  ;;  %v512_v50 = vsel %vm2628_vm15, %v1527_v13, %v1528_v12  ;;  %v1541_v53 = vpop.permute.xlu0 %1540  ;;  %vm2633_vm15 = vcmask 982016  }
  0xa6   : > { %vm2044_vm10 = vmpackc.low %vm2618_vm0, %vm2608_vm11  ;;  %v1310_v17 = vpack.c.bf16 %v484_v60, %v470_v63  ;;  %vm2537_vm0 = vcmask 990208   ;;  %v546_v55 = vsel %vm2633_vm15, %v1538_v40, %v1537_v42  ;;  %v1543_v60 = vunpack.i.h.bf16 %v1541_v53 }
  0xa7   : > { %v2620_v6 = vsel %vm2044_vm10, 4294967295, %v2619_v6  ;;  %vm2530_vm7 = vmand %vm2606_vm12, %vm1810_vm13  ;;  %1308 = vmatprep.subr.msk.bf16.mxu0 %vm2044_vm10, %v1307_v2  ;;  %v530_v46 = vsel %vm2537_vm0, %v1533_v33, %v1532_v34  ;;  %v526_v51 = vsel %vm2537_vm0, %v1532_v34, %v1533_v33  ;;  %v1542_v63 = vunpack.i.l.bf16 %v1541_v53  ;;  %v2333_v53 = vld [vmem:[%s2492_s2] sm:$0xff] }
  0xa8   : > { %vm2066_vm8 = vmpackc.low %vm2530_vm7, %vm2606_vm12  ;;  %v1319_v52 = vpack.c.bf16 %v530_v46, %v516_v27  ;;  %v1322_v7 = vpack.c.bf16 %v526_v51, %v512_v50  ;;  %vm2639_vm15 = vcmask 973824   ;;  %v1186_v51 = vld [vmem:[%s2496_s6] sm:$0xff]  ;;  %v1268_v20 = vcombine.low %v2333_v53, %v2333_v53 }
  0xa9   : > { %v2622_v26 = vsel %vm2066_vm8, 4294967295, %v2621_v26  ;;  %vm2074_vm3 = vmpackc.low %vm2623_vm14, %vm1769_vm2  ;;  %1311 = vmatpush1.bf16.msk.msra.mxu0 %vm2066_vm8, %v1310_v17  ;;  %vm2629_vm8 = vnez %v2567_v32  ;;  %v560_v15 = vsel %vm2639_vm15, %v1543_v60, %v1542_v63  ;;  %v2666_v32 = vmov 0 }
  0xaa   : > { %v2625_v37 = vsel %vm2074_vm3, 4294967295, %v2624_v37  ;;  %vm2081_vm7 = vmpackc.low %vm2623_vm14, %vm2595_vm4  ;;  %1314 = vmatprep.subr.msk.bf16.mxu0 %vm2074_vm3, %v1313_v23  ;;  %v1325_v13 = vpack.c.bf16 %v560_v15, %v546_v55  ;;  %v2652_v23 = vmov 0  ;;  %v1269_v55 = vcombine.high %v2333_v53, %v2333_v53 }
  0xab   : > { %v2627_v43 = vsel %vm2081_vm7, 4294967295, %v2626_v43  ;;  %vm2630_vm14 = vmand %vm2629_vm8, %vm1769_vm2 }
  0xac   : > { %vm2105_vm10 = vmpackc.low %vm2630_vm14, %vm1783_vm6 }
  0xad   : > { %v2632_v54 = vsel %vm2105_vm10, 4294967295, %v2631_v54  ;;  %vm2114_vm0 = vmand %vm2538_vm1, %vm2608_vm11  ;;  %1317 = vmatpush1.bf16.msk.msra.mxu0 %vm2081_vm7, %v1316_v44 }
  0xae   : > { %vm2636_vm14 = vmand %vm1832_vm5, %vm2595_vm4  ;;  %1320 = vmatprep.subr.msk.bf16.mxu0 %vm2105_vm10, %v1319_v52  ;;  %v1178_v52 = vld [vmem:[%s2495_s5] sm:$0xff] }
  0xaf   : > { %vm2125_vm9 = vmpackc.low %vm2636_vm14, %vm1810_vm13  ;;  %vm2643_vm14 = vcmask 982016  }
  0xb0   : > { %v2638_v5 = vsel %vm2125_vm9, 4294967295, %v2637_v5  ;;  %vm2640_vm11 = vmand %vm2629_vm8, %vm1783_vm6  ;;  %v542_v9 = vsel %vm2643_vm14, %v1537_v42, %v1538_v40 }
  0xb1   : > { %vm2139_vm1 = vmpackc.low %vm2640_vm11, %vm2629_vm8  ;;  %1323 = vmatpush1.bf16.msk.msra.mxu0 %vm2125_vm9, %v1322_v7 }
  0xb2   : > { %v2642_v8 = vsel %vm2139_vm1, 4294967295, %v2641_v8  ;;  %vm2644_vm3 = vmmov %vm2639_vm15  ;;  %1326 = vmatprep.subr.msk.bf16.mxu0 %vm2139_vm1, %v1325_v13 }
  0xb3   : > { %v556_v12 = vsel %vm2644_vm3, %v1542_v63, %v1543_v60  ;;  %vm570_vm15 = vmand %vm2114_vm0, %vm1769_vm2  ;;  %vm2649_vm3 = vcmp.lt.s32.totalorder %v1760_v11, 192  ;;  %v2668_v11 = vmov 0 }
  0xb4   : > { %vm2155_vm11 = vmand %vm1832_vm5, %vm1810_vm13  ;;  %v1328_v19 = vpack.c.bf16 %v556_v12, %v542_v9 }
  0xb5   : > { %vm2167_vm14 = vmpackc.low %vm2114_vm0, %vm570_vm15  ;;  %v615_v29 = vsel %vm2155_vm11, %v1981_v38, 0.0 }
  0xb6   : > { %vm580_vm10 = vmand %vm2114_vm0, %vm1783_vm6  ;;  %v772_v38 = vpop.permute.xlu0 %771 }
  0xb7   : > { %vm586_vm7 = vmand %vm2649_vm3, %vm1769_vm2 }
  0xb8   : > { %vm2650_vm15 = vmpackc.low %vm2155_vm11, %vm1832_vm5 }
  0xb9   : > { %1329 = vmatpush1.bf16.msk.msra.mxu0 %vm2650_vm15, %v1328_v19  ;;  %vm2651_vm1 = vmand %vm2606_vm12, %vm2595_vm4 }
  0xba   : > { %vm2193_vm9 = vmpackc.low %vm2606_vm12, %vm2651_vm1  ;;  %1332 = vmatprep.subr.msk.bf16.mxu0 %vm2167_vm14, %v1863_v49 }
  0xbb   : > { %v2653_v23 = vsel %vm2193_vm9, 4294967295, %v2652_v23  ;;  %vm2200_vm0 = vmpackc.low %vm586_vm7, %vm580_vm10 }
  0xbc   : > { %vm596_vm15 = vmand %vm2649_vm3, %vm1783_vm6 }
  0xbd   : > { %1335 = vmatpush1.bf16.msk.msra.mxu0 %vm2193_vm9, %v1850_v47  ;;  %vm2656_vm1 = vmand %vm2606_vm12, %vm1810_vm13  ;;  %v2671_v47 = vmov 0 }
  0xbe   : > { %vm2218_vm10 = vmpackc.low %vm2595_vm4, %vm2656_vm1  ;;  %1338 = vmatprep.subr.msk.bf16.mxu0 %vm2200_vm0, %v1908_v62  ;;  %v700_v62 = vpack.c.bf16 %v615_v29, %v615_v29 }
  0xbf   : > { %vm2659_vm7 = vmmov %vm2649_vm3 }
  0xc0   : > { %vm2227_vm3 = vmpackc.low %vm596_vm15, %vm2659_vm7  ;;  %vm2665_vm15 = vmmov 1  }
  0xc1   : > { %vm2662_vm12 = vmmov %vm2659_vm7  ;;  %1341 = vmatpush1.bf16.msk.msra.mxu0 %vm2218_vm10, %v1876_v57 }
  0xc2   : > { %vm2235_vm9 = vmand %vm2662_vm12, %vm2629_vm8  ;;  %1344 = vmatprep.subr.msk.bf16.mxu0 %vm2227_vm3, %v1933_v14  ;;  %v764_v14 = vpop.permute.xlu1 %763 }
  0xc3   : > { %vm604_vm1 = vmand %vm2235_vm9, %vm1769_vm2 }
  0xc4   : > { %vm2249_vm7 = vmpackc.low %vm1810_vm13, %vm2665_vm15  ;;  %vm2676_vm15 = vcmask 596992  }
  0xc5   : > { %v2667_v32 = vsel %vm2249_vm7, 4294967295, %v2666_v32  ;;  %vm2546_vm2 = vmand %vm2235_vm9, %vm1783_vm6  ;;  %1347 = vmatpush1.bf16.msk.msra.mxu0 %vm2249_vm7, %v1912_v3  ;;  %vm2724_vm7 = vnez %v2638_v5 }
  0xc6   : > { %vm2262_vm8 = vmpackc.low %vm2235_vm9, %vm604_vm1  ;;  %v616_v16 = vsel %vm2546_vm2, %v1989_v41, 0.0  ;;  %vm2545_vm1 = vcmask 1043456  }
  0xc7   : > { %v2669_v11 = vsel %vm2262_vm8, 4294967295, %v2668_v11  ;;  %1350 = vmatprep.subr.msk.bf16.mxu0 %vm2262_vm8, %v1974_v36  ;;  %vm2670_vm13 = vmand %vm1832_vm5, %vm2595_vm4  ;;  %v701_v57 = vpack.c.bf16 %v616_v16, %v616_v16  ;;  %v714_v3 = vsel %vm2545_vm1, %v700_v62, 0  ;;  %vm2675_vm4 = vcmask 719872  }
  0xc8   : > { %vm2288_vm12 = vmpackc.low %vm1832_vm5, %vm2670_vm13  ;;  %1271 = vmatprep.mubr.msk.bf16.mxu1 %vm2675_vm4, %v1269_v55  ;;  %vm2677_vm13 = vcmask 588800   ;;  %vm2680_vm4 = vnez %v2563_v28  ;;  %vm2710_vm8 = vnez %v2616_v59 }
  0xc9   : > { %v2672_v47 = vsel %vm2288_vm12, 4294967295, %v2671_v47  ;;  %1353 = vmatpush1.bf16.msk.msra.mxu0 %vm2288_vm12, %v1946_v24  ;;  %vm2679_vm2 = vmmov %vm2677_vm13  ;;  %vm2685_vm12 = vnez %v2578_v48 }
  0xca   : > { %1266 = vmatprep.subr.msk.bf16.mxu0 %vm2545_vm1, %v701_v57  ;;  %vm2678_vm1 = vmmov %vm2676_vm15 }
  0xcd   : > { %746 = vmatpush1.bf16.msra.mxu0 %v714_v3 }
  0xd0   : > { %752 = vmatmul.mubr.bf16.vlgmr.msra.gmra.mrb[0].mxu0 %v1264_v22 }
 0x1a3   : > { %v753_v36 = vpop.f32.mrb[0].mxu0 }
 0x1a4   : > { %v766_v41 = vmul.f32 %v764_v14, %v753_v36  ;;  %v755_v31 = vpop.f32.mrb[1].mxu0 }
 0x1a5   : > { %v767_v33 = vmul.f32 %v764_v14, %v755_v31  ;;  %v757_v34 = vpop.f32.mrb[2].mxu0 }
 0x1a6   : > { %v774_v40 = vadd.f32 %v772_v38, %v766_v41  ;;  %v758_v42 = vpop.f32.mrb[3].mxu0 }
 0x1a7   : > { %v775_v24 = vadd.f32 %v772_v38, %v767_v33 }
 0x1a8   : > { %v2299_v44 = vmax.f32 %v774_v40, 0.0 }
 0x1a9   : > { %v2301_v46 = vmax.f32 %v775_v24, 0.0 }
 0x1ab   : > { %v1556_v50 = vpack.i.bf16 %v2299_v44, %v2301_v46  ;;  %v1616_v4 = vpack.i.bf16 %v2301_v46, %v2299_v44 }
 0x1ad   : > { %1557 = vrot.lane.b32.xlu0 %v1556_v50, %s1643_s30  ;;  %1547 = vrot.lane.b32.xlu1 %v1556_v50, %s1644_s8 }
 0x1b1   : > { %1567 = vrot.lane.b32.xlu0 %v1556_v50, %s1648_s12  ;;  %1552 = vrot.lane.b32.xlu1 %v1556_v50, %s1646_s10 }
 0x1b5   : > { %1577 = vrot.lane.b32.xlu0 %v1556_v50, %s1650_s14  ;;  %1562 = vrot.lane.b32.xlu1 %v1556_v50, %s1645_s9  ;;  %s2674_s9 = smov 120   ;;  %s2735_s14 = sshll.u32 %s2737_s25, 4 }
 0x1b9   : > { %1587 = vrot.lane.b32.xlu0 %v1556_v50, %s1652_s16  ;;  %1572 = vrot.lane.b32.xlu1 %v1556_v50, %s1647_s11 }
 0x1bd   : > { %1597 = vrot.lane.b32.xlu0 %v1556_v50, %s1654_s18  ;;  %1582 = vrot.lane.b32.xlu1 %v1556_v50, %s1649_s13 }
 0x1c1   : > { %1607 = vrot.lane.b32.xlu0 %v1556_v50, %s1655_s19  ;;  %1592 = vrot.lane.b32.xlu1 %v1556_v50, %s1651_s15 }
 0x1c5   : > { %1617 = vrot.lane.b32.xlu0 %v1616_v4, %s1657_s21  ;;  %1602 = vrot.lane.b32.xlu1 %v1556_v50, %s1653_s17  ;;  %s278_s17 = scalar_lea.vmem %s2497_s7, %s2735_s14 }
 0x1c9   : > { %1627 = vrot.lane.b32.xlu0 %v1616_v4, %s1659_s23  ;;  %1612 = vrot.lane.b32.xlu1 %v1616_v4, %s2673_s26 }
 0x1cd   : > { %1189 = vperm.xlu0 %1545, %v1186_v51   ;;  %1622 = vrot.lane.b32.xlu1 %v1616_v4, %s2674_s9 }
 0x1d1   : > { %1181 = vperm.xlu1 %1544, %v1178_v52  }
 0x21f   : > { %v1558_v60 = vpop.permute.xlu0 %1557  ;;  %v1548_v63 = vpop.permute.xlu1 %1547 }
 0x220   : > { %v1550_v2 = vunpack.i.h.bf16 %v1548_v63  ;;  %v1549_v7 = vunpack.i.l.bf16 %v1548_v63  ;;  %v1560_v19 = vunpack.i.h.bf16 %v1558_v60  ;;  %v1559_v16 = vunpack.i.l.bf16 %v1558_v60 }
 0x222   : > { %v785_v29 = vsel %vm2676_vm15, %v1550_v2, %v1549_v7  ;;  %v788_v62 = vsel %vm2678_vm1, %v1549_v7, %v1550_v2  ;;  %vm2681_vm15 = vcmask 580608   ;;  %vm2683_vm1 = vcmask 531456  }
 0x223   : > { %v1568_v15 = vpop.permute.xlu0 %1567  ;;  %v1553_v9 = vpop.permute.xlu1 %1552  ;;  %v811_v40 = vsel %vm2681_vm15, %v1560_v19, %v1559_v16 }
 0x224   : > { %v1555_v12 = vunpack.i.h.bf16 %v1553_v9  ;;  %v1554_v13 = vunpack.i.l.bf16 %v1553_v9  ;;  %v1570_v33 = vunpack.i.h.bf16 %v1568_v15  ;;  %v1569_v34 = vunpack.i.l.bf16 %v1568_v15 }
 0x226   : > { %v798_v57 = vsel %vm2677_vm13, %v1555_v12, %v1554_v13  ;;  %v801_v3 = vsel %vm2679_vm2, %v1554_v13, %v1555_v12  ;;  %vm2682_vm13 = vmmov %vm2681_vm15 }
 0x227   : > { %v1578_v22 = vpop.permute.xlu0 %1577  ;;  %v1563_v14 = vpop.permute.xlu1 %1562  ;;  %v2342_v36 = vpack.c.bf16 %v798_v57, %v785_v29  ;;  %v2344_v38 = vpack.c.bf16 %v801_v3, %v788_v62  ;;  %v814_v42 = vsel %vm2682_vm13, %v1559_v16, %v1560_v19  ;;  %vm2684_vm2 = vmmov %vm2683_vm1  ;;  %vm2688_vm13 = vnez %v2581_v56 }
 0x228   : > { %v1565_v41 = vunpack.i.h.bf16 %v1563_v14  ;;  %v1564_v31 = vunpack.i.l.bf16 %v1563_v14  ;;  %v1580_v7 = vunpack.i.h.bf16 %v1578_v22  ;;  %v1579_v15 = vunpack.i.l.bf16 %v1578_v22 }
 0x229   : > { %1356 = vmatprep.subr.msk.bf16.mxu1 %vm2680_vm4, %v2342_v36  ;;  %vm2686_vm4 = vcmask 523264  }
 0x22a   : > { %v824_v24 = vsel %vm2683_vm1, %v1565_v41, %v1564_v31  ;;  %v827_v50 = vsel %vm2684_vm2, %v1564_v31, %v1565_v41  ;;  %1359 = vmatpush1.bf16.msk.msra.mxu1 %vm2685_vm12, %v2344_v38  ;;  %v837_v63 = vsel %vm2686_vm4, %v1570_v33, %v1569_v34  ;;  %vm2687_vm15 = vmmov %vm2686_vm4  ;;  %vm2689_vm1 = vcmask 515072  }
 0x22b   : > { %v2356_v4 = vpack.c.bf16 %v824_v24, %v811_v40  ;;  %v2358_v51 = vpack.c.bf16 %v827_v50, %v814_v42  ;;  %v1588_v52 = vpop.permute.xlu0 %1587  ;;  %v1573_v55 = vpop.permute.xlu1 %1572  ;;  %v840_v2 = vsel %vm2687_vm15, %v1569_v34, %v1570_v33  ;;  %vm2690_vm12 = vmmov %vm2689_vm1  ;;  %vm2691_vm2 = vnez %v2584_v58 }
 0x22c   : > { %v1575_v28 = vunpack.i.h.bf16 %v1573_v55  ;;  %v1574_v60 = vunpack.i.l.bf16 %v1573_v55  ;;  %v1590_v56 = vunpack.i.h.bf16 %v1588_v52  ;;  %v1589_v62 = vunpack.i.l.bf16 %v1588_v52 }
 0x22d   : > { %1362 = vmatprep.subr.msk.bf16.mxu1 %vm2688_vm13, %v2356_v4  ;;  %vm2692_vm4 = vnez %v2588_v61  ;;  %vm2693_vm15 = vcmask 465920  }
 0x22e   : > { %v850_v48 = vsel %vm2689_vm1, %v1575_v28, %v1574_v60  ;;  %v853_v9 = vsel %vm2690_vm12, %v1574_v60, %v1575_v28  ;;  %1365 = vmatpush1.bf16.msk.msra.mxu1 %vm2691_vm2, %v2358_v51  ;;  %v863_v3 = vsel %vm2693_vm15, %v1580_v7, %v1579_v15  ;;  %vm2694_vm13 = vmmov %vm2693_vm15  ;;  %vm2695_vm1 = vcmask 457728  }
 0x22f   : > { %v2370_v12 = vpack.c.bf16 %v850_v48, %v837_v63  ;;  %v2372_v13 = vpack.c.bf16 %v853_v9, %v840_v2  ;;  %v1598_v19 = vpop.permute.xlu0 %1597  ;;  %v1583_v16 = vpop.permute.xlu1 %1582  ;;  %v866_v22 = vsel %vm2694_vm13, %v1579_v15, %v1580_v7  ;;  %vm2696_vm12 = vmmov %vm2695_vm1  ;;  %vm2697_vm2 = vnez %v2598_v25 }
 0x230   : > { %v1585_v29 = vunpack.i.h.bf16 %v1583_v16  ;;  %v1584_v57 = vunpack.i.l.bf16 %v1583_v16  ;;  %v1600_v50 = vunpack.i.h.bf16 %v1598_v19  ;;  %v1599_v52 = vunpack.i.l.bf16 %v1598_v19 }
 0x231   : > { %1368 = vmatprep.subr.msk.bf16.mxu1 %vm2692_vm4, %v2370_v12  ;;  %vm2698_vm4 = vcmask 449536   ;;  %vm2700_vm13 = vnez %v2601_v10 }
 0x232   : > { %v876_v58 = vsel %vm2695_vm1, %v1585_v29, %v1584_v57  ;;  %v879_v14 = vsel %vm2696_vm12, %v1584_v57, %v1585_v29  ;;  %1371 = vmatpush1.bf16.msk.msra.mxu1 %vm2697_vm2, %v2372_v13  ;;  %v2389_v42 = vsel %vm2698_vm4, %v1590_v56, %v1589_v62  ;;  %vm2699_vm15 = vmmov %vm2698_vm4  ;;  %vm2701_vm1 = vcmask 72704  }
 0x233   : > { %v2384_v41 = vpack.c.bf16 %v876_v58, %v863_v3  ;;  %v2386_v31 = vpack.c.bf16 %v879_v14, %v866_v22  ;;  %v1608_v33 = vpop.permute.xlu0 %1607  ;;  %v1593_v34 = vpop.permute.xlu1 %1592  ;;  %v2392_v24 = vsel %vm2699_vm15, %v1589_v62, %v1590_v56  ;;  %vm2702_vm12 = vmmov %vm2701_vm1  ;;  %vm2703_vm2 = vnez %v2603_v35 }
 0x234   : > { %v1595_v61 = vunpack.i.h.bf16 %v1593_v34  ;;  %v1594_v40 = vunpack.i.l.bf16 %v1593_v34  ;;  %v1610_v25 = vunpack.i.h.bf16 %v1608_v33  ;;  %v1609_v55 = vunpack.i.l.bf16 %v1608_v33 }
 0x235   : > { %1374 = vmatprep.subr.msk.bf16.mxu1 %vm2700_vm13, %v2384_v41  ;;  %vm2704_vm4 = vcmask 64512   ;;  %vm2705_vm15 = vnez %v2611_v45 }
 0x236   : > { %v902_v28 = vsel %vm2701_vm1, %v1595_v61, %v1594_v40  ;;  %v905_v60 = vsel %vm2702_vm12, %v1594_v40, %v1595_v61  ;;  %1377 = vmatpush1.bf16.msk.msra.mxu1 %vm2703_vm2, %v2386_v31  ;;  %v915_v10 = vsel %vm2704_vm4, %v1600_v50, %v1599_v52  ;;  %vm2706_vm13 = vmmov %vm2704_vm4  ;;  %vm2707_vm1 = vcmask 7168  }
 0x237   : > { %v1379_v63 = vpack.c.bf16 %v902_v28, %v2389_v42  ;;  %v1382_v2 = vpack.c.bf16 %v905_v60, %v2392_v24  ;;  %v1618_v7 = vpop.permute.xlu0 %1617  ;;  %v1603_v15 = vpop.permute.xlu1 %1602  ;;  %v918_v19 = vsel %vm2706_vm13, %v1599_v52, %v1600_v50  ;;  %v941_v16 = vsel %vm2707_vm1, %v1610_v25, %v1609_v55  ;;  %vm2711_vm4 = vmmov %vm2707_vm1 }
 0x238   : > { %v1605_v48 = vunpack.i.h.bf16 %v1603_v15  ;;  %v1604_v9 = vunpack.i.l.bf16 %v1603_v15  ;;  %vm2708_vm12 = vcmask 56320   ;;  %v1620_v57 = vunpack.i.h.bf16 %v1618_v7 }
 0x239   : > { %1380 = vmatprep.subr.msk.bf16.mxu1 %vm2705_vm15, %v1379_v63  ;;  %vm2709_vm2 = vmmov %vm2708_vm12  ;;  %v1619_v56 = vunpack.i.l.bf16 %v1618_v7  ;;  %v944_v58 = vsel %vm2711_vm4, %v1609_v55, %v1610_v25  ;;  %v1391_v33 = vpack.c.bf16 %v2301_v46, %v941_v16  ;;  %vm2712_vm15 = vnez %v2620_v6 }
 0x23a   : > { %v928_v35 = vsel %vm2708_vm12, %v1605_v48, %v1604_v9  ;;  %v931_v29 = vsel %vm2709_vm2, %v1604_v9, %v1605_v48  ;;  %1383 = vmatpush1.bf16.msk.msra.mxu1 %vm2710_vm8, %v1382_v2  ;;  %vm2713_vm13 = vcmask 1039360   ;;  %vm2714_vm1 = vnez %v2622_v26 }
 0x23b   : > { %v1385_v62 = vpack.c.bf16 %v928_v35, %v915_v10  ;;  %v1388_v3 = vpack.c.bf16 %v931_v29, %v918_v19  ;;  %v1613_v22 = vpop.permute.xlu1 %1612  ;;  %v1628_v34 = vpop.permute.xlu0 %1627  ;;  %v1394_v59 = vpack.c.bf16 %v2299_v44, %v944_v58  ;;  %vm2715_vm8 = vcmask 990208   ;;  %vm2717_vm2 = vmmov %vm2713_vm13 }
 0x23c   : > { %v1615_v45 = vunpack.i.h.bf16 %v1613_v22  ;;  %v1614_v14 = vunpack.i.l.bf16 %v1613_v22  ;;  %v972_v40 = vsel %vm2715_vm8, %v1620_v57, %v1619_v56  ;;  %vm2716_vm12 = vnez %v2625_v37 }
 0x23d   : > { %1386 = vmatprep.subr.msk.bf16.mxu1 %vm2712_vm15, %v1385_v62  ;;  %v1630_v52 = vunpack.i.h.bf16 %v1628_v34  ;;  %v1629_v25 = vunpack.i.l.bf16 %v1628_v34  ;;  %vm2718_vm4 = vcmask 982016   ;;  %vm2719_vm15 = vnez %v2627_v43 }
 0x23e   : > { %v959_v61 = vsel %vm2713_vm13, %v1615_v45, %v1614_v14  ;;  %1389 = vmatpush1.bf16.msk.msra.mxu1 %vm2714_vm1, %v1388_v3  ;;  %v955_v6 = vsel %vm2717_vm2, %v1614_v14, %v1615_v45  ;;  %vm2720_vm13 = vmmov %vm2715_vm8  ;;  %vm2721_vm1 = vnez %v2632_v54  ;;  %vm2722_vm8 = vcmask 973824  }
 0x23f   : > { %v1623_v50 = vpop.permute.xlu1 %1622  ;;  %1392 = vmatprep.subr.msk.bf16.mxu1 %vm2716_vm12, %v1391_v33  ;;  %v1397_v28 = vpack.c.bf16 %v972_v40, %v959_v61  ;;  %v968_v26 = vsel %vm2720_vm13, %v1619_v56, %v1620_v57  ;;  %v998_v37 = vsel %vm2722_vm8, %v1630_v52, %v1629_v25  ;;  %vm2723_vm12 = vmmov %vm2718_vm4  ;;  %vm2728_vm13 = vnez %v2653_v23 }
 0x240   : > { %v1625_v46 = vunpack.i.h.bf16 %v1623_v50  ;;  %v1624_v55 = vunpack.i.l.bf16 %v1623_v50  ;;  %v1400_v44 = vpack.c.bf16 %v968_v26, %v955_v6  ;;  %vm2725_vm2 = vmmov %vm2722_vm8  ;;  %v1035_v54 = vsel %vm2155_vm11, %v2389_v42, 0.0 }
 0x241   : > { %v994_v7 = vsel %vm2725_vm2, %v1629_v25, %v1630_v52 }
 0x242   : > { %v985_v60 = vsel %vm2718_vm4, %v1625_v46, %v1624_v55  ;;  %1395 = vmatpush1.bf16.msk.msra.mxu1 %vm2719_vm15, %v1394_v59  ;;  %v981_v63 = vsel %vm2723_vm12, %v1624_v55, %v1625_v46  ;;  %vm2726_vm4 = vnez %v2642_v8  ;;  %vm2727_vm15 = vmpackc.low %vm2155_vm11, %vm1832_vm5  ;;  %v1120_v8 = vpack.c.bf16 %v1035_v54, %v1035_v54 }
 0x243   : > { %1398 = vmatprep.subr.msk.bf16.mxu1 %vm2721_vm1, %v1397_v28  ;;  %v1403_v2 = vpack.c.bf16 %v998_v37, %v985_v60  ;;  %v1406_v43 = vpack.c.bf16 %v994_v7, %v981_v63  ;;  %vm2729_vm5 = vmand %vm2235_vm9, %vm1783_vm6  ;;  %vm2733_vm6 = vcmask 1043456  }
 0x244   : > { %v1036_v39 = vsel %vm2729_vm5, %v2392_v24, 0.0  ;;  %vm2734_vm9 = vmmov %vm2733_vm6 }
 0x245   : > { %v1121_v5 = vpack.c.bf16 %v1036_v39, %v1036_v39  ;;  %v1132_v21 = vsel %vm2734_vm9, %v1120_v8, 0 }
 0x246   : > { %1401 = vmatpush1.bf16.msk.msra.mxu1 %vm2724_vm7, %v1400_v44 }
 0x247   : > { %1404 = vmatprep.subr.msk.bf16.mxu1 %vm2726_vm4, %v1403_v2 }
 0x24a   : > { %1407 = vmatpush1.bf16.msk.msra.mxu1 %vm2727_vm15, %v1406_v43 }
 0x24b   : > { %1410 = vmatprep.subr.msk.bf16.mxu1 %vm2167_vm14, %v2344_v38  ;;  %vm2730_vm14 = vnez %v2667_v32 }
 0x24c   : > { %v1190_v30 = vpop.permute.xlu0 %1189 }
 0x24e   : > { %1413 = vmatpush1.bf16.msk.msra.mxu1 %vm2728_vm13, %v2342_v36 }
 0x24f   : > { %1416 = vmatprep.subr.msk.bf16.mxu1 %vm2200_vm0, %v2358_v51  ;;  %vm2731_vm0 = vnez %v2669_v11 }
 0x250   : > { %v1182_v17 = vpop.permute.xlu1 %1181 }
 0x252   : > { %1419 = vmatpush1.bf16.msk.msra.mxu1 %vm2218_vm10, %v2356_v4  ;;  %vm2732_vm10 = vnez %v2672_v47 }
 0x253   : > { %1422 = vmatprep.subr.msk.bf16.mxu1 %vm2227_vm3, %v2372_v13 }
 0x256   : > { %1425 = vmatpush1.bf16.msk.msra.mxu1 %vm2730_vm14, %v2370_v12 }
 0x257   : > { %1428 = vmatprep.subr.msk.bf16.mxu1 %vm2731_vm0, %v2386_v31 }
 0x25a   : > { %1431 = vmatpush1.bf16.msk.msra.mxu1 %vm2732_vm10, %v2384_v41 }
 0x25b   : > { %1270 = vmatprep.subr.msk.bf16.mxu1 %vm2733_vm6, %v1121_v5 }
 0x25e   : > { %1164 = vmatpush1.bf16.msra.mxu1 %v1132_v21 }
 0x261   : > { %1170 = vmatmul.mubr.bf16.vlgmr.msra.gmra.mrb[0].mxu1 %v1268_v20 }
 0x334   : > { %v1171_v23 = vpop.f32.mrb[0].mxu1 }
 0x335   : > { %v1184_v27 = vmul.f32 %v1182_v17, %v1171_v23  ;;  %v1173_v49 = vpop.f32.mrb[1].mxu1 }
 0x336   : > { %v1185_v18 = vmul.f32 %v1182_v17, %v1173_v49  ;;  %v1175_v32 = vpop.f32.mrb[2].mxu1 }
 0x337   : > { %v1192_v11 = vadd.f32 %v1190_v30, %v1184_v27  ;;  %v1176_v47 = vpop.f32.mrb[3].mxu1 }
 0x338   : > { %v1193_v36 = vadd.f32 %v1190_v30, %v1185_v18 }
 0x339   : > { %v1194_v38 = vadd.f32 %v1192_v11, %v1718_v0 }
 0x33a   : > { %v1195_v53 = vadd.f32 %v1193_v36, %v1720_v1 }
 0x33b   : > { %v1196_v4 = vmax.f32 %v1194_v38, 0.0 }
 0x33c   : > { %v1197_v51 = vmax.f32 %v1195_v53, 0.0 }
 0x33d   : > { %1198 = vst [vmem:[%s278_s17] sm:$0xff] %v1196_v4 }
 0x33e   : > { %1199 = vst [vmem:[%s278_s17 + $0x8] sm:$0xff] %v1197_v51 }
 0x33f PF: > { %s17_s24 = sadd.s32 1, %s1641_s24  }
 0x340   : > { %p14_p4 = scmp.ge.s32.totalorder %s17_s24, 4  }
 0x342   :  { %16 = sbr.rel (!%p14_p4) target bundleno = 1 (0x1), region = 78 }

</bundles_post_ra>
